<compile_context>
chip_gen: v7x
topology: tpu7x:2x2x1
jax: 0.10.0
libtpu: 0.0.40
codegen_flags: <defaults>
</compile_context>

<pallas_src>
import functools
import math

import numpy as np

import jax
import jax.numpy as jnp
from jax.experimental import pallas as pl
from jax.experimental.pallas import tpu as pltpu

WINDOW_SIZE = 11
SIGMA = 1.5


def gaussian_1d(window_size, sigma):
    # Deterministic "parameter" of the module (create_window): normalized 1D gaussian.
    g = np.array(
        [math.exp(-((x - window_size // 2) ** 2) / (2.0 * sigma ** 2))
         for x in range(window_size)],
        dtype=np.float64,
    )
    return g / g.sum()


@functools.lru_cache(maxsize=None)
def _separable_conv_constants(H, W, ws, n_stack):
    """Cached, device-resident separable conv matrices.

    kw[w, j] = g[w - j]  (VALID row conv), kh[h, i] = g[h - i]  (VALID col conv).
    Both are returned transposed and pre-broadcast to the batched-einsum operand
    shapes (n_stack, OW, W) / (n_stack, OH, H)."""
    g = gaussian_1d(ws, SIGMA)
    OH, OW = H - ws + 1, W - ws + 1
    kw = np.zeros((W, OW), dtype=np.float64)
    for j in range(OW):
        kw[j:j + ws, j] = g
    kh = np.zeros((H, OH), dtype=np.float64)
    for i in range(OH):
        kh[i:i + ws, i] = g
    kwt_b = np.broadcast_to(kw.T[None].astype(np.float32), (n_stack, OW, W)).copy()
    kht_b = np.broadcast_to(kh.T[None].astype(np.float32), (n_stack, OH, H)).copy()
    return jnp.asarray(kwt_b), jnp.asarray(kht_b)


def _make_ssim_kernel(NC, H, W, ws):
    OH, OW = H - ws + 1, W - ws + 1
    inv_count = 1.0 / float(NC * OH * OW)

    def kernel(x1_ref, x2_ref, kwt_ref, kht_ref, out_ref):
        x1 = x1_ref[...]                      # (NC, H, W)
        x2 = x2_ref[...]

        # Dynamic value range L (val_range=None path of the reference).
        maxv = jnp.max(x1, axis=2, keepdims=True)
        maxv = jnp.max(maxv, axis=1, keepdims=True)
        maxv = jnp.max(maxv, axis=0, keepdims=True)       # (1, 1, 1)
        minv = jnp.min(x1, axis=2, keepdims=True)
        minv = jnp.min(minv, axis=1, keepdims=True)
        minv = jnp.min(minv, axis=0, keepdims=True)       # (1, 1, 1)
        max_val = jnp.where(maxv > 128.0, 255.0, 1.0)
        min_val = jnp.where(minv < -0.5, -1.0, 0.0)
        L = max_val - min_val
        t1 = 0.01 * L
        t2 = 0.03 * L
        c1 = t1 * t1
        c2 = t2 * t2
        # Hoist the broadcasts once (JAX does not CSE broadcast_in_dim).
        c1b = jnp.broadcast_to(c1, (NC, OW, OH))
        c2b = jnp.broadcast_to(c2, (NC, OW, OH))

        # Five conv inputs stacked into one slab, built in registers (no VMEM
        # scratch round trip).
        stack = jnp.concatenate([x1, x2, x1 * x1, x2 * x2, x1 * x2], axis=0)  # (5NC, H, W)

        # Separable depthwise Gaussian conv as two batched MXU matmuls.
        # Row conv (contract W): result[n, j, h] = sum_w kw[w, j] * stack[n, h, w]
        kwt = kwt_ref[...]                    # (5NC, OW, W)
        kht = kht_ref[...]                    # (5NC, OH, H)
        r = jnp.einsum('njw,nhw->njh', kwt, stack,
                       preferred_element_type=jnp.float32)      # (5NC, OW, H)
        # Column conv (contract H): conv[n, j, i] = sum_h kh[h, i] * r[n, j, h]
        conv = jnp.einsum('njh,nih->nji', r, kht,
                          preferred_element_type=jnp.float32)   # (5NC, OW, OH)

        mu1 = conv[0 * NC:1 * NC]
        mu2 = conv[1 * NC:2 * NC]
        e11 = conv[2 * NC:3 * NC]
        e22 = conv[3 * NC:4 * NC]
        e12 = conv[4 * NC:5 * NC]

        mu1_sq = mu1 * mu1
        mu2_sq = mu2 * mu2
        mu1_mu2 = mu1 * mu2
        sigma1_sq = e11 - mu1_sq
        sigma2_sq = e22 - mu2_sq
        sigma12 = e12 - mu1_mu2

        v1 = 2.0 * sigma12 + c2b
        v2 = sigma1_sq + sigma2_sq + c2b
        num = (2.0 * mu1_mu2 + c1b) * v1
        den = (mu1_sq + mu2_sq + c1b) * v2
        # approx=True -> single EUP vrcp on an otherwise-idle slot; rel err ~2^-12.
        ssim_map = num * pl.reciprocal(den, approx=True)

        # size_average=True -> mean over all elements (lane, sublane, then outer).
        s = jnp.sum(ssim_map, axis=2, keepdims=True)
        s = jnp.sum(s, axis=1, keepdims=True)
        s = jnp.sum(s, axis=0, keepdims=True)               # (1, 1, 1)
        out_ref[...] = s * inv_count

    return kernel


def ssim_pallas(img1, img2, window_size=WINDOW_SIZE):
    img1 = jnp.asarray(img1, jnp.float32)
    img2 = jnp.asarray(img2, jnp.float32)
    N, C, H, W = img1.shape
    NC = N * C
    ws = min(window_size, H, W)               # matches the reference real_size

    kwt_b, kht_b = _separable_conv_constants(H, W, ws, 5 * NC)
    x1 = img1.reshape(NC, H, W)               # depthwise: fold N*C into batch
    x2 = img2.reshape(NC, H, W)

    kernel = _make_ssim_kernel(NC, H, W, ws)
    out = pl.pallas_call(
        kernel,
        out_shape=jax.ShapeDtypeStruct((1, 1, 1), jnp.float32),
        in_specs=[pl.BlockSpec(memory_space=pltpu.MemorySpace.VMEM)] * 4,
        out_specs=pl.BlockSpec(memory_space=pltpu.MemorySpace.VMEM),
    )(x1, x2, kwt_b, kht_b)
    return out[0, 0, 0]


def ssim_ref_numpy(img1, img2, window_size=WINDOW_SIZE):
    # Pure-numpy reference reproducing the PyTorch semantics (for verification).
    a = np.asarray(img1, np.float64)
    b = np.asarray(img2, np.float64)
    N, C, H, W = a.shape
    ws = min(window_size, H, W)
    g = gaussian_1d(ws, SIGMA)
    w2 = np.outer(g, g)
    OH, OW = H - ws + 1, W - ws + 1

    def conv(x):
        out = np.zeros((N, C, OH, OW))
        for i in range(OH):
            for j in range(OW):
                out[:, :, i, j] = np.sum(x[:, :, i:i + ws, j:j + ws] * w2, axis=(2, 3))
        return out

    max_val = 255.0 if a.max() > 128 else 1.0
    min_val = -1.0 if a.min() < -0.5 else 0.0
    L = max_val - min_val
    C1 = (0.01 * L) ** 2
    C2 = (0.03 * L) ** 2
    mu1, mu2 = conv(a), conv(b)
    mu1_sq, mu2_sq, mu1_mu2 = mu1 ** 2, mu2 ** 2, mu1 * mu2
    s1 = conv(a * a) - mu1_sq
    s2 = conv(b * b) - mu2_sq
    s12 = conv(a * b) - mu1_mu2
    v1 = 2.0 * s12 + C2
    v2 = s1 + s2 + C2
    ssim_map = (2 * mu1_mu2 + C1) * v1 / ((mu1_sq + mu2_sq + C1) * v2)
    return float(ssim_map.mean())


if __name__ == "__main__":
    key = jax.random.PRNGKey(0)
    k1, k2 = jax.random.split(key)
    img1 = jax.random.uniform(k1, (2, 4, 16, 16), dtype=jnp.float32)
    img2 = jnp.clip(
        img1 + 0.05 * jax.random.normal(k2, (2, 4, 16, 16), dtype=jnp.float32), 0.0, 1.0
    )

    out = ssim_pallas(img1, img2)
    out = jax.block_until_ready(out)

    ref = ssim_ref_numpy(np.asarray(img1), np.asarray(img2))
    assert np.isfinite(float(out)), float(out)
    # Tolerance covers the approx EUP reciprocal (~2^-12 rel) and MXU f32 pass
    # decomposition vs the float64 reference; tight enough to catch semantic bugs.
    assert abs(float(out) - ref) < 2e-3, (float(out), ref)
    print("KERNEL_OK")
</pallas_src>

<mosaic_0001>
module attributes {stable_mosaic.version = 11 : i64} {
  func.func @kernel(%arg0: memref<8x16x16xf32, #tpu.memory_space<vmem>>, %arg1: memref<8x16x16xf32, #tpu.memory_space<vmem>>, %arg2: memref<40x6x16xf32, #tpu.memory_space<vmem>>, %arg3: memref<40x6x16xf32, #tpu.memory_space<vmem>>, %arg4: memref<1x1x1xf32, #tpu.memory_space<vmem>>) attributes {dimension_semantics = [], scalar_prefetch = 0 : i64, scratch_operands = 0 : i64, tpu.core_type = #tpu.core_type<tc>} {
    %c0 = arith.constant 0 : index
    %c0_0 = arith.constant 0 : index
    %c0_1 = arith.constant 0 : index
    %0 = vector.load %arg0[%c0, %c0_0, %c0_1] : memref<8x16x16xf32, #tpu.memory_space<vmem>>, vector<8x16x16xf32>
    %c0_2 = arith.constant 0 : index
    %c0_3 = arith.constant 0 : index
    %c0_4 = arith.constant 0 : index
    %1 = vector.load %arg1[%c0_2, %c0_3, %c0_4] : memref<8x16x16xf32, #tpu.memory_space<vmem>>, vector<8x16x16xf32>
    %cst = arith.constant dense<0xFF800000> : vector<8x16xf32>
    %2 = vector.multi_reduction <maximumf>, %0, %cst [2] : vector<8x16x16xf32> to vector<8x16xf32>
    %3 = vector.shape_cast %2 : vector<8x16xf32> to vector<8x16x1xf32>
    %cst_5 = arith.constant dense<0xFF800000> : vector<8x1xf32>
    %4 = vector.multi_reduction <maximumf>, %3, %cst_5 [1] : vector<8x16x1xf32> to vector<8x1xf32>
    %5 = vector.shape_cast %4 : vector<8x1xf32> to vector<8x1x1xf32>
    %cst_6 = arith.constant dense<0xFF800000> : vector<1x1xf32>
    %6 = vector.multi_reduction <maximumf>, %5, %cst_6 [0] : vector<8x1x1xf32> to vector<1x1xf32>
    %7 = vector.shape_cast %6 : vector<1x1xf32> to vector<1x1x1xf32>
    %cst_7 = arith.constant dense<0x7F800000> : vector<8x16xf32>
    %8 = vector.multi_reduction <minimumf>, %0, %cst_7 [2] : vector<8x16x16xf32> to vector<8x16xf32>
    %9 = vector.shape_cast %8 : vector<8x16xf32> to vector<8x16x1xf32>
    %cst_8 = arith.constant dense<0x7F800000> : vector<8x1xf32>
    %10 = vector.multi_reduction <minimumf>, %9, %cst_8 [1] : vector<8x16x1xf32> to vector<8x1xf32>
    %11 = vector.shape_cast %10 : vector<8x1xf32> to vector<8x1x1xf32>
    %cst_9 = arith.constant dense<0x7F800000> : vector<1x1xf32>
    %12 = vector.multi_reduction <minimumf>, %11, %cst_9 [0] : vector<8x1x1xf32> to vector<1x1xf32>
    %13 = vector.shape_cast %12 : vector<1x1xf32> to vector<1x1x1xf32>
    %cst_10 = arith.constant 1.280000e+02 : f32
    %14 = vector.broadcast %cst_10 : f32 to vector<1x1x1xf32>
    %15 = arith.cmpf ogt, %7, %14 : vector<1x1x1xf32>
    %cst_11 = arith.constant 2.550000e+02 : f32
    %cst_12 = arith.constant 1.000000e+00 : f32
    %16 = vector.broadcast %cst_11 : f32 to vector<1x1x1xf32>
    %17 = vector.broadcast %cst_12 : f32 to vector<1x1x1xf32>
    %18 = arith.select %15, %16, %17 : vector<1x1x1xi1>, vector<1x1x1xf32>
    %cst_13 = arith.constant -5.000000e-01 : f32
    %19 = vector.broadcast %cst_13 : f32 to vector<1x1x1xf32>
    %20 = arith.cmpf olt, %13, %19 : vector<1x1x1xf32>
    %cst_14 = arith.constant -1.000000e+00 : f32
    %cst_15 = arith.constant 0.000000e+00 : f32
    %21 = vector.broadcast %cst_14 : f32 to vector<1x1x1xf32>
    %22 = vector.broadcast %cst_15 : f32 to vector<1x1x1xf32>
    %23 = arith.select %20, %21, %22 : vector<1x1x1xi1>, vector<1x1x1xf32>
    %24 = arith.subf %18, %23 : vector<1x1x1xf32>
    %cst_16 = arith.constant 0.00999999977 : f32
    %25 = vector.broadcast %cst_16 : f32 to vector<1x1x1xf32>
    %26 = arith.mulf %25, %24 : vector<1x1x1xf32>
    %cst_17 = arith.constant 3.000000e-02 : f32
    %27 = vector.broadcast %cst_17 : f32 to vector<1x1x1xf32>
    %28 = arith.mulf %27, %24 : vector<1x1x1xf32>
    %29 = arith.mulf %26, %26 : vector<1x1x1xf32>
    %30 = arith.mulf %28, %28 : vector<1x1x1xf32>
    %31 = vector.shape_cast %29 : vector<1x1x1xf32> to vector<1x1x1xf32>
    %32 = vector.broadcast %31 : vector<1x1x1xf32> to vector<8x6x6xf32>
    %33 = vector.shape_cast %30 : vector<1x1x1xf32> to vector<1x1x1xf32>
    %34 = vector.broadcast %33 : vector<1x1x1xf32> to vector<8x6x6xf32>
    %35 = arith.mulf %0, %0 : vector<8x16x16xf32>
    %36 = arith.mulf %1, %1 : vector<8x16x16xf32>
    %37 = arith.mulf %0, %1 : vector<8x16x16xf32>
    %38 = tpu.concatenate %0, %1, %35, %36, %37 in 0 : vector<8x16x16xf32>, vector<8x16x16xf32>, vector<8x16x16xf32>, vector<8x16x16xf32>, vector<8x16x16xf32> -> vector<40x16x16xf32>
    %c0_18 = arith.constant 0 : index
    %c0_19 = arith.constant 0 : index
    %c0_20 = arith.constant 0 : index
    %39 = vector.load %arg2[%c0_18, %c0_19, %c0_20] : memref<40x6x16xf32, #tpu.memory_space<vmem>>, vector<40x6x16xf32>
    %c0_21 = arith.constant 0 : index
    %c0_22 = arith.constant 0 : index
    %c0_23 = arith.constant 0 : index
    %40 = vector.load %arg3[%c0_21, %c0_22, %c0_23] : memref<40x6x16xf32, #tpu.memory_space<vmem>>, vector<40x6x16xf32>
    "tpu.trace_start"() <{level = 10 : i32, message = "njw,nhw->njh"}> : () -> ()
    %cst_24 = arith.constant dense<0.000000e+00> : vector<40x6x16xf32>
    %41 = tpu.matmul %39, %38, %cst_24 {dimension_numbers = #tpu.dot_dimension_numbers<[2], [2], [1], [1], [0, 0, 0, 1, 1, 1], [0], [0]>} : vector<40x6x16xf32>, vector<40x16x16xf32>, vector<40x6x16xf32> -> vector<40x6x16xf32>
    "tpu.trace_stop"() : () -> ()
    "tpu.trace_start"() <{level = 10 : i32, message = "njh,nih->nji"}> : () -> ()
    %cst_25 = arith.constant dense<0.000000e+00> : vector<40x6x6xf32>
    %42 = tpu.matmul %41, %40, %cst_25 {dimension_numbers = #tpu.dot_dimension_numbers<[2], [2], [1], [1], [0, 0, 0, 1, 1, 1], [0], [0]>} : vector<40x6x16xf32>, vector<40x6x16xf32>, vector<40x6x6xf32> -> vector<40x6x6xf32>
    "tpu.trace_stop"() : () -> ()
    %43 = vector.extract_strided_slice %42 {offsets = [0, 0, 0], sizes = [8, 6, 6], strides = [1, 1, 1]} : vector<40x6x6xf32> to vector<8x6x6xf32>
    %44 = vector.extract_strided_slice %42 {offsets = [8, 0, 0], sizes = [8, 6, 6], strides = [1, 1, 1]} : vector<40x6x6xf32> to vector<8x6x6xf32>
    %45 = vector.extract_strided_slice %42 {offsets = [16, 0, 0], sizes = [8, 6, 6], strides = [1, 1, 1]} : vector<40x6x6xf32> to vector<8x6x6xf32>
    %46 = vector.extract_strided_slice %42 {offsets = [24, 0, 0], sizes = [8, 6, 6], strides = [1, 1, 1]} : vector<40x6x6xf32> to vector<8x6x6xf32>
    %47 = vector.extract_strided_slice %42 {offsets = [32, 0, 0], sizes = [8, 6, 6], strides = [1, 1, 1]} : vector<40x6x6xf32> to vector<8x6x6xf32>
    %48 = arith.mulf %43, %43 : vector<8x6x6xf32>
    %49 = arith.mulf %44, %44 : vector<8x6x6xf32>
    %50 = arith.mulf %43, %44 : vector<8x6x6xf32>
    %51 = arith.subf %45, %48 : vector<8x6x6xf32>
    %52 = arith.subf %46, %49 : vector<8x6x6xf32>
    %53 = arith.subf %47, %50 : vector<8x6x6xf32>
    %cst_26 = arith.constant 2.000000e+00 : f32
    %54 = vector.broadcast %cst_26 : f32 to vector<8x6x6xf32>
    %55 = arith.mulf %54, %53 : vector<8x6x6xf32>
    %56 = arith.addf %55, %34 : vector<8x6x6xf32>
    %57 = arith.addf %51, %52 : vector<8x6x6xf32>
    %58 = arith.addf %57, %34 : vector<8x6x6xf32>
    %cst_27 = arith.constant 2.000000e+00 : f32
    %59 = vector.broadcast %cst_27 : f32 to vector<8x6x6xf32>
    %60 = arith.mulf %59, %50 : vector<8x6x6xf32>
    %61 = arith.addf %60, %32 : vector<8x6x6xf32>
    %62 = arith.mulf %61, %56 : vector<8x6x6xf32>
    %63 = arith.addf %48, %49 : vector<8x6x6xf32>
    %64 = arith.addf %63, %32 : vector<8x6x6xf32>
    %65 = arith.mulf %64, %58 : vector<8x6x6xf32>
    %66 = tpu.reciprocal %65 {approx = true} : vector<8x6x6xf32> -> vector<8x6x6xf32>
    %67 = arith.mulf %62, %66 : vector<8x6x6xf32>
    %cst_28 = arith.constant dense<0.000000e+00> : vector<8x6xf32>
    %68 = vector.multi_reduction <add>, %67, %cst_28 [2] : vector<8x6x6xf32> to vector<8x6xf32>
    %69 = vector.shape_cast %68 : vector<8x6xf32> to vector<8x6x1xf32>
    %cst_29 = arith.constant dense<0.000000e+00> : vector<8x1xf32>
    %70 = vector.multi_reduction <add>, %69, %cst_29 [1] : vector<8x6x1xf32> to vector<8x1xf32>
    %71 = vector.shape_cast %70 : vector<8x1xf32> to vector<8x1x1xf32>
    %cst_30 = arith.constant dense<0.000000e+00> : vector<1x1xf32>
    %72 = vector.multi_reduction <add>, %71, %cst_30 [0] : vector<8x1x1xf32> to vector<1x1xf32>
    %73 = vector.shape_cast %72 : vector<1x1xf32> to vector<1x1x1xf32>
    %cst_31 = arith.constant 0.00347222225 : f32
    %74 = vector.broadcast %cst_31 : f32 to vector<1x1x1xf32>
    %75 = arith.mulf %73, %74 : vector<1x1x1xf32>
    %c0_32 = arith.constant 0 : index
    %c0_33 = arith.constant 0 : index
    %c0_34 = arith.constant 0 : index
    %76 = vector.load %arg4[%c0_32, %c0_33, %c0_34] : memref<1x1x1xf32, #tpu.memory_space<vmem>>, vector<1x1x1xf32>
    tpu.vector_store %arg4[%c0_32, %c0_33, %c0_34], %75 {strides = array<i32>} : memref<1x1x1xf32, #tpu.memory_space<vmem>>, vector<1x1x1xf32>,
    return
  }
}

</mosaic_0001>

<bundles_post_ra>
// kernel: tpu_custom_call.1
= control target key start
LH: loop header
LB: loop body
LE: loop exit
PB: predicated region body
PF: predicated region fallthrough
CT: control target
= control target key end

     0   :  { %vm50_vm0 = vcmask 130048   ;;  %v7945_v3 = vmov 0.0|0.0   ;;  %vm7946_vm2 = vmmov 0   ;;  %v9361_v8 = vmov 0.0   ;;  %s9356_s0 = inlined_call_operand.vmem [shape: f32[8,16,16], index: 0, kind: input, shape index: {}]   ;;  %s9357_s1 = inlined_call_operand.vmem [shape: f32[8,16,16], index: 1, kind: input, shape index: {}]   ;;  %s9358_s2 = inlined_call_operand.vmem [shape: f32[40,6,16], index: 2, kind: input, shape index: {}]   ;;  %s9359_s3 = inlined_call_operand.vmem [shape: f32[40,6,16], index: 3, kind: input, shape index: {}]   ;;  %s9360_s4 = inlined_call_operand.hbm [shape: f32[1,1,1], index: 4, kind: output, shape index: {}]  }
   0x1   :  { %v7978_v0 = vld [vmem:[%s9356_s0] sm:$0xff]  ;;  %v7983_v1 = vld [vmem:[%s9356_s0 + $0x8] sm:$0xff]  ;;  %v7988_v2 = vld [vmem:[%s9356_s0 + $0x10] sm:$0xff]  ;;  %7740 = vmatprep.subr.bf16.mxu0 %v7945_v3  ;;  %7744 = vmatprep.subr.bf16.mxu1 %v7945_v3 }
   0x2   :  { %v7741_v4 = vpack.c.bf16 %v7983_v1, %v7978_v0  ;;  %vm7996_vm1 = vmpackc.low %vm50_vm0, %vm50_vm0  ;;  %v8003_v6 = vld [vmem:[%s9356_s0 + $0x18] sm:$0xff]  ;;  %7264 = vmatprep.mubr.msk.f32.mxu0 %vm7946_vm2, %v9361_v8  ;;  %7271 = vmatprep.mubr.msk.f32.mxu1 %vm7946_vm2, %v9361_v8  ;;  %v8019_v9 = vld [vmem:[%s9356_s0 + $0x20] sm:$0xff] }
   0x3   :  { %v7745_v7 = vpack.c.bf16 %v8003_v6, %v7988_v2  ;;  %v8024_v10 = vld [vmem:[%s9356_s0 + $0x28] sm:$0xff]  ;;  %v8030_v11 = vld [vmem:[%s9356_s0 + $0x30] sm:$0xff]  ;;  %v8035_v12 = vld [vmem:[%s9356_s0 + $0x38] sm:$0xff] }
   0x4   :  { %7743 = vmatpush3.bf16.xpose.msk.msra.mxu0 %vm7996_vm1, %v7741_v4  ;;  %v330_v13 = vld [vmem:[%s9358_s2] sm:$0x3f]  ;;  %v7749_v14 = vpack.c.bf16 %v8024_v10, %v8019_v9  ;;  %v331_v15 = vld [vmem:[%s9358_s2 + $0x8] sm:$0x3f]  ;;  %v7753_v16 = vpack.c.bf16 %v8035_v12, %v8030_v11  ;;  %v8071_v19 = vld [vmem:[%s9356_s0 + $0x50] sm:$0xff] }
   0x5   :  { %7747 = vmatpush3.bf16.xpose.msk.msra.mxu1 %vm7996_vm1, %v7745_v7  ;;  %7748 = vmatprep.subr.bf16.mxu0 %v7945_v3  ;;  %v8058_v17 = vld [vmem:[%s9356_s0 + $0x40] sm:$0xff]  ;;  %v8063_v18 = vld [vmem:[%s9356_s0 + $0x48] sm:$0xff]  ;;  %v8076_v20 = vld [vmem:[%s9356_s0 + $0x58] sm:$0xff] }
   0x6   :  { %7752 = vmatprep.subr.bf16.mxu1 %v7945_v3  ;;  %v332_v21 = vld [vmem:[%s9358_s2 + $0x10] sm:$0x3f]  ;;  %v7757_v22 = vpack.c.bf16 %v8063_v18, %v8058_v17  ;;  %v333_v23 = vld [vmem:[%s9358_s2 + $0x18] sm:$0x3f]  ;;  %v7761_v24 = vpack.c.bf16 %v8076_v20, %v8071_v19  ;;  %v8092_v25 = vld [vmem:[%s9357_s1] sm:$0xff] }
   0x7   :  { %v8097_v26 = vld [vmem:[%s9357_s1 + $0x8] sm:$0xff]  ;;  %v8102_v27 = vld [vmem:[%s9357_s1 + $0x10] sm:$0xff]  ;;  %v8107_v28 = vld [vmem:[%s9357_s1 + $0x18] sm:$0xff]  ;;  %v8127_v32 = vmul.f32 %v8092_v25, %v7978_v0 }
   0x8   :  { %v8113_v29 = vld [vmem:[%s9356_s0 + $0x60] sm:$0xff]  ;;  %v8118_v30 = vld [vmem:[%s9356_s0 + $0x68] sm:$0xff]  ;;  %v8131_v33 = vmul.f32 %v8097_v26, %v7983_v1  ;;  %v8135_v34 = vmul.f32 %v8102_v27, %v7988_v2  ;;  %v8139_v35 = vmul.f32 %v8107_v28, %v8003_v6  ;;  %v8147_v36 = vld [vmem:[%s9356_s0 + $0x70] sm:$0xff] }
   0x9   :  { %v8123_v31 = vld [vmem:[%s9357_s1 + $0x20] sm:$0xff]  ;;  %v8152_v37 = vld [vmem:[%s9356_s0 + $0x78] sm:$0xff]  ;;  %v8157_v38 = vld [vmem:[%s9357_s1 + $0x28] sm:$0xff]  ;;  %v7765_v57 = vpack.c.bf16 %v8118_v30, %v8113_v29 }
   0xa   :  { %v8161_v39 = vmul.f32 %v8123_v31, %v8019_v9  ;;  %v8170_v40 = vld [vmem:[%s9357_s1 + $0x30] sm:$0xff]  ;;  %v8175_v41 = vld [vmem:[%s9357_s1 + $0x38] sm:$0xff]  ;;  %v8180_v42 = vld [vmem:[%s9357_s1 + $0x40] sm:$0xff]  ;;  %v7869_v43 = vpack.c.bf16 %v8131_v33, %v8127_v32  ;;  %v7873_v44 = vpack.c.bf16 %v8139_v35, %v8135_v34  ;;  %v8188_v45 = vmul.f32 %v8157_v38, %v8024_v10 }
   0xb   :  { %7265 = vmatmul.mubr.msk.f32.vlgmr.msra.gmra.mrb[0].mxu0 %vm50_vm0, %v330_v13  ;;  %v8196_v46 = vld [vmem:[%s9357_s1 + $0x48] sm:$0xff]  ;;  %v8201_v47 = vld [vmem:[%s9357_s1 + $0x50] sm:$0xff]  ;;  %v8206_v48 = vld [vmem:[%s9357_s1 + $0x58] sm:$0xff]  ;;  %v8210_v49 = vmul.f32 %v8170_v40, %v8030_v11  ;;  %v8214_v50 = vmul.f32 %v8175_v41, %v8035_v12  ;;  %v8218_v51 = vmul.f32 %v8180_v42, %v8058_v17  ;;  %v7769_v58 = vpack.c.bf16 %v8152_v37, %v8147_v36 }
   0xc   :  { %7272 = vmatmul.mubr.msk.f32.vlgmr.msra.gmra.mrb[0].mxu1 %vm50_vm0, %v331_v15  ;;  %7751 = vmatpush3.bf16.xpose.msk.msra.mxu0 %vm7996_vm1, %v7749_v14  ;;  %v334_v52 = vld [vmem:[%s9358_s2 + $0x20] sm:$0x3f]  ;;  %v7877_v53 = vpack.c.bf16 %v8188_v45, %v8161_v39  ;;  %v8228_v54 = vmul.f32 %v8196_v46, %v8063_v18  ;;  %v8232_v55 = vmul.f32 %v8201_v47, %v8071_v19  ;;  %v8250_v60 = vld [vmem:[%s9357_s1 + $0x68] sm:$0xff] }
   0xd   :  { %7755 = vmatpush3.bf16.xpose.msk.msra.mxu1 %vm7996_vm1, %v7753_v16  ;;  %7278 = vmatprep.mubr.msk.f32.mxu0 %vm7946_vm2, %v9361_v8  ;;  %v8236_v56 = vmul.f32 %v8206_v48, %v8076_v20  ;;  %v8245_v59 = vld [vmem:[%s9357_s1 + $0x60] sm:$0xff] }
   0xe   :  { %7285 = vmatprep.mubr.msk.f32.mxu1 %vm7946_vm2, %v9361_v8  ;;  %7756 = vmatprep.subr.bf16.mxu0 %v7945_v3 }
   0xf   :  { %7760 = vmatprep.subr.bf16.mxu1 %v7945_v3 }
  0x13   :  { %7279 = vmatmul.mubr.msk.f32.vlgmr.msra.gmra.mrb[2].mxu0 %vm50_vm0, %v332_v21 }
  0x14   :  { %7286 = vmatmul.mubr.msk.f32.vlgmr.msra.gmra.mrb[2].mxu1 %vm50_vm0, %v333_v23  ;;  %7759 = vmatpush3.bf16.xpose.msk.msra.mxu0 %vm7996_vm1, %v7757_v22 }
  0x15   :  { %7763 = vmatpush3.bf16.xpose.msk.msra.mxu1 %vm7996_vm1, %v7761_v24  ;;  %7292 = vmatprep.mubr.msk.f32.mxu0 %vm7946_vm2, %v9361_v8 }
  0x16   :  { %7299 = vmatprep.mubr.msk.f32.mxu1 %vm7946_vm2, %v9361_v8  ;;  %7764 = vmatprep.subr.bf16.mxu0 %v7945_v3 }
  0x17   :  { %7768 = vmatprep.subr.bf16.mxu1 %v7945_v3 }
  0x18   :  { %9 = vsyncpa [#allocation3], 0  ;;  %v335_v62 = vld [vmem:[%s9358_s2 + $0x28] sm:$0x3f]  ;;  %v8260_v63 = vld [vmem:[%s9357_s1 + $0x70] sm:$0xff]  ;;  %v8273_v14 = vmul.f32 %v8245_v59, %v8113_v29  ;;  %v8277_v15 = vmul.f32 %v8250_v60, %v8118_v30  ;;  %v283_v23 = vmul.f32 %v7983_v1, %v7983_v1  ;;  %v286_v7 = vmul.f32 %v8019_v9, %v8019_v9 }
  0x19   :  { %v8265_v4 = vld [vmem:[%s9357_s1 + $0x78] sm:$0xff]  ;;  %v8281_v16 = vmul.f32 %v8260_v63, %v8147_v36  ;;  %v336_v24 = vld [vmem:[%s9358_s2 + $0x30] sm:$0x3f]  ;;  %v287_v61 = vmul.f32 %v8024_v10, %v8024_v10  ;;  %v362_v32 = vld [vmem:[%s9358_s2 + $0x100] sm:$0x3f]  ;;  %v84_v33 = vsel %vm50_vm0, %v8076_v20, -inf }
  0x1a   :  { %v8285_v21 = vmul.f32 %v8265_v4, %v8152_v37  ;;  %v345_v22 = vld [vmem:[%s9358_s2 + $0x78] sm:$0x3f]  ;;  %v363_v34 = vld [vmem:[%s9358_s2 + $0x108] sm:$0x3f]  ;;  %v81_v35 = vsel %vm50_vm0, %v8071_v19, -inf  ;;  %v87_v45 = vsel %vm50_vm0, %v8113_v29, -inf }
  0x1b   :  { %7293 = vmatmul.mubr.msk.f32.vlgmr.msra.gmra.mrb[4].mxu0 %vm50_vm0, %v334_v52  ;;  %v7773_v52 = vpack.c.bf16 %v8097_v26, %v8092_v25  ;;  %v364_v39 = vld [vmem:[%s9358_s2 + $0x110] sm:$0x3f]  ;;  %v168_v5 = vsel %vm50_vm0, %v7988_v2, inf  ;;  %vm6754_vm5 = vcmask 46080   ;;  %vm6779_vm6 = vcmask 1045504  }
  0x1c   :  { %7300 = vmatmul.mubr.msk.f32.vlgmr.msra.gmra.mrb[4].mxu1 %vm50_vm0, %v335_v62  ;;  %7767 = vmatpush3.bf16.xpose.msk.msra.mxu0 %vm7996_vm1, %v7765_v57  ;;  %v337_v57 = vld [vmem:[%s9358_s2 + $0x38] sm:$0x3f]  ;;  %v338_v62 = vld [vmem:[%s9358_s2 + $0x40] sm:$0x3f]  ;;  %vm6844_vm7 = vcmask 0  }
  0x1d   :  { %7771 = vmatpush3.bf16.xpose.msk.msra.mxu1 %vm7996_vm1, %v7769_v58  ;;  %7306 = vmatprep.mubr.msk.f32.mxu0 %vm7946_vm2, %v9361_v8  ;;  %v7777_v58 = vpack.c.bf16 %v8107_v28, %v8102_v27 }
  0x1e   :  { %7313 = vmatprep.mubr.msk.f32.mxu1 %vm7946_vm2, %v9361_v8  ;;  %7772 = vmatprep.subr.bf16.mxu0 %v7945_v3 }
  0x1f   :  { %7776 = vmatprep.subr.bf16.mxu1 %v7945_v3 }
  0x23   :  { %7307 = vmatmul.mubr.msk.f32.vlgmr.msra.gmra.mrb[6].mxu0 %vm50_vm0, %v336_v24  ;;  %v7781_v24 = vpack.c.bf16 %v8157_v38, %v8123_v31 }
  0x24   :  { %7314 = vmatmul.mubr.msk.f32.vlgmr.msra.gmra.mrb[6].mxu1 %vm50_vm0, %v337_v57  ;;  %7775 = vmatpush3.bf16.xpose.msk.msra.mxu0 %vm7996_vm1, %v7773_v52  ;;  %v339_v52 = vld [vmem:[%s9358_s2 + $0x48] sm:$0x3f]  ;;  %v7785_v57 = vpack.c.bf16 %v8175_v41, %v8170_v40 }
  0x25   :  { %7779 = vmatpush3.bf16.xpose.msk.msra.mxu1 %vm7996_vm1, %v7777_v58  ;;  %7320 = vmatprep.mubr.msk.f32.mxu0 %vm7946_vm2, %v9361_v8  ;;  %v340_v58 = vld [vmem:[%s9358_s2 + $0x50] sm:$0x3f] }
  0x26   :  { %7327 = vmatprep.mubr.msk.f32.mxu1 %vm7946_vm2, %v9361_v8  ;;  %7780 = vmatprep.subr.bf16.mxu0 %v7945_v3 }
  0x27   :  { %7784 = vmatprep.subr.bf16.mxu1 %v7945_v3 }
  0x2b   :  { %7321 = vmatmul.mubr.msk.f32.vlgmr.msra.gmra.mrb[8].mxu0 %vm50_vm0, %v338_v62  ;;  %v7789_v62 = vpack.c.bf16 %v8196_v46, %v8180_v42 }
  0x2c   :  { %7328 = vmatmul.mubr.msk.f32.vlgmr.msra.gmra.mrb[8].mxu1 %vm50_vm0, %v339_v52  ;;  %7783 = vmatpush3.bf16.xpose.msk.msra.mxu0 %vm7996_vm1, %v7781_v24  ;;  %v341_v24 = vld [vmem:[%s9358_s2 + $0x58] sm:$0x3f]  ;;  %v7793_v52 = vpack.c.bf16 %v8206_v48, %v8201_v47 }
  0x2d   :  { %7787 = vmatpush3.bf16.xpose.msk.msra.mxu1 %vm7996_vm1, %v7785_v57  ;;  %7334 = vmatprep.mubr.msk.f32.mxu0 %vm7946_vm2, %v9361_v8  ;;  %v342_v57 = vld [vmem:[%s9358_s2 + $0x60] sm:$0x3f] }
  0x2e   :  { %7341 = vmatprep.mubr.msk.f32.mxu1 %vm7946_vm2, %v9361_v8  ;;  %7788 = vmatprep.subr.bf16.mxu0 %v7945_v3 }
  0x2f   :  { %7792 = vmatprep.subr.bf16.mxu1 %v7945_v3 }
  0x33   :  { %7335 = vmatmul.mubr.msk.f32.vlgmr.msra.gmra.mrb[10].mxu0 %vm50_vm0, %v340_v58  ;;  %v7797_v58 = vpack.c.bf16 %v8250_v60, %v8245_v59 }
  0x34   :  { %7342 = vmatmul.mubr.msk.f32.vlgmr.msra.gmra.mrb[10].mxu1 %vm50_vm0, %v341_v24  ;;  %7791 = vmatpush3.bf16.xpose.msk.msra.mxu0 %vm7996_vm1, %v7789_v62  ;;  %v343_v62 = vld [vmem:[%s9358_s2 + $0x68] sm:$0x3f]  ;;  %v7801_v24 = vpack.c.bf16 %v8265_v4, %v8260_v63 }
  0x35   :  { %7795 = vmatpush3.bf16.xpose.msk.msra.mxu1 %vm7996_vm1, %v7793_v52  ;;  %7348 = vmatprep.mubr.msk.f32.mxu0 %vm7946_vm2, %v9361_v8  ;;  %v282_v52 = vmul.f32 %v7978_v0, %v7978_v0 }
  0x36   :  { %7355 = vmatprep.mubr.msk.f32.mxu1 %vm7946_vm2, %v9361_v8  ;;  %7796 = vmatprep.subr.bf16.mxu0 %v7945_v3 }
  0x37   :  { %7800 = vmatprep.subr.bf16.mxu1 %v7945_v3 }
  0x3b   :  { %7349 = vmatmul.mubr.msk.f32.vlgmr.msra.gmra.mrb[12].mxu0 %vm50_vm0, %v342_v57  ;;  %v284_v57 = vmul.f32 %v7988_v2, %v7988_v2 }
  0x3c   :  { %7356 = vmatmul.mubr.msk.f32.vlgmr.msra.gmra.mrb[12].mxu1 %vm50_vm0, %v343_v62  ;;  %7799 = vmatpush3.bf16.xpose.msk.msra.mxu0 %vm7996_vm1, %v7797_v58  ;;  %v285_v62 = vmul.f32 %v8003_v6, %v8003_v6  ;;  %v344_v58 = vld [vmem:[%s9358_s2 + $0x70] sm:$0x3f] }
  0x3d   :  { %7803 = vmatpush3.bf16.xpose.msk.msra.mxu1 %vm7996_vm1, %v7801_v24  ;;  %7362 = vmatprep.mubr.msk.f32.mxu0 %vm7946_vm2, %v9361_v8  ;;  %v7805_v24 = vpack.c.bf16 %v283_v23, %v282_v52  ;;  %v288_v23 = vmul.f32 %v8030_v11, %v8030_v11  ;;  %v7813_v52 = vpack.c.bf16 %v287_v61, %v286_v7 }
  0x3e   :  { %7369 = vmatprep.mubr.msk.f32.mxu1 %vm7946_vm2, %v9361_v8  ;;  %7804 = vmatprep.subr.bf16.mxu0 %v7945_v3  ;;  %v7809_v13 = vpack.c.bf16 %v285_v62, %v284_v57  ;;  %v347_v57 = vld [vmem:[%s9358_s2 + $0x88] sm:$0x3f]  ;;  %v292_v61 = vmul.f32 %v8071_v19, %v8071_v19  ;;  %v293_v7 = vmul.f32 %v8076_v20, %v8076_v20 }
  0x3f   :  { %7808 = vmatprep.subr.bf16.mxu1 %v7945_v3 }
  0x43   :  { %7363 = vmatmul.mubr.msk.f32.vlgmr.msra.gmra.mrb[14].mxu0 %vm50_vm0, %v344_v58  ;;  %v290_v58 = vmul.f32 %v8058_v17, %v8058_v17 }
  0x44   :  { %7370 = vmatmul.mubr.msk.f32.vlgmr.msra.gmra.mrb[14].mxu1 %vm50_vm0, %v345_v22  ;;  %7807 = vmatpush3.bf16.xpose.msk.msra.mxu0 %vm7996_vm1, %v7805_v24  ;;  %v289_v22 = vmul.f32 %v8035_v12, %v8035_v12  ;;  %v291_v24 = vmul.f32 %v8063_v18, %v8063_v18 }
  0x45   :  { %7811 = vmatpush3.bf16.xpose.msk.msra.mxu1 %vm7996_vm1, %v7809_v13  ;;  %7376 = vmatprep.mubr.msk.f32.mxu0 %vm7946_vm2, %v9361_v8  ;;  %v346_v13 = vld [vmem:[%s9358_s2 + $0x80] sm:$0x3f] }
  0x46   :  { %7383 = vmatprep.mubr.msk.f32.mxu1 %vm7946_vm2, %v9361_v8  ;;  %7812 = vmatprep.subr.bf16.mxu0 %v7945_v3  ;;  %v7817_v62 = vpack.c.bf16 %v289_v22, %v288_v23  ;;  %v348_v23 = vld [vmem:[%s9358_s2 + $0x90] sm:$0x3f]  ;;  %v7821_v22 = vpack.c.bf16 %v291_v24, %v290_v58  ;;  %v296_v58 = vmul.f32 %v8147_v36, %v8147_v36 }
  0x47   :  { %7816 = vmatprep.subr.bf16.mxu1 %v7945_v3  ;;  %v297_v24 = vmul.f32 %v8152_v37, %v8152_v37 }
  0x4b   :  { %7377 = vmatmul.mubr.msk.f32.vlgmr.msra.gmra.mrb[16].mxu0 %vm50_vm0, %v346_v13  ;;  %v349_v13 = vld [vmem:[%s9358_s2 + $0x98] sm:$0x3f] }
  0x4c   :  { %7384 = vmatmul.mubr.msk.f32.vlgmr.msra.gmra.mrb[16].mxu1 %vm50_vm0, %v347_v57  ;;  %7815 = vmatpush3.bf16.xpose.msk.msra.mxu0 %vm7996_vm1, %v7813_v52  ;;  %v7825_v52 = vpack.c.bf16 %v293_v7, %v292_v61  ;;  %v294_v57 = vmul.f32 %v8113_v29, %v8113_v29  ;;  %v350_v61 = vld [vmem:[%s9358_s2 + $0xa0] sm:$0x3f] }
  0x4d   :  { %7819 = vmatpush3.bf16.xpose.msk.msra.mxu1 %vm7996_vm1, %v7817_v62  ;;  %7390 = vmatprep.mubr.msk.f32.mxu0 %vm7946_vm2, %v9361_v8  ;;  %v295_v62 = vmul.f32 %v8118_v30, %v8118_v30 }
  0x4e   :  { %7397 = vmatprep.mubr.msk.f32.mxu1 %vm7946_vm2, %v9361_v8  ;;  %7820 = vmatprep.subr.bf16.mxu0 %v7945_v3 }
  0x4f   :  { %7824 = vmatprep.subr.bf16.mxu1 %v7945_v3  ;;  %v7829_v7 = vpack.c.bf16 %v295_v62, %v294_v57  ;;  %v300_v57 = vmul.f32 %v8102_v27, %v8102_v27  ;;  %v301_v62 = vmul.f32 %v8107_v28, %v8107_v28  ;;  %v302_v28 = vmul.f32 %v8123_v31, %v8123_v31  ;;  %v354_v31 = vld [vmem:[%s9358_s2 + $0xc0] sm:$0x3f] }
  0x51   :  { %v7841_v27 = vpack.c.bf16 %v301_v62, %v300_v57  ;;  %v57_v57 = vsel %vm50_vm0, %v7988_v2, -inf  ;;  %v177_v2 = vsel %vm50_vm0, %v8024_v10, inf }
  0x52   :  { %58 = vmax.xlane.f32.xlu1 %v57_v57  ;;  %v195_v57 = vsel %vm50_vm0, %v8076_v20, inf }
  0x53   :  { %7391 = vmatmul.mubr.msk.f32.vlgmr.msra.gmra.mrb[18].mxu0 %vm50_vm0, %v348_v23  ;;  %v351_v23 = vld [vmem:[%s9358_s2 + $0xa8] sm:$0x3f] }
  0x54   :  { %7398 = vmatmul.mubr.msk.f32.vlgmr.msra.gmra.mrb[18].mxu1 %vm50_vm0, %v349_v13  ;;  %7823 = vmatpush3.bf16.xpose.msk.msra.mxu0 %vm7996_vm1, %v7821_v22  ;;  %v7833_v22 = vpack.c.bf16 %v297_v24, %v296_v58  ;;  %v298_v13 = vmul.f32 %v8092_v25, %v8092_v25  ;;  %v352_v25 = vld [vmem:[%s9358_s2 + $0xb0] sm:$0x3f]  ;;  %v353_v58 = vld [vmem:[%s9358_s2 + $0xb8] sm:$0x3f]  ;;  %v303_v24 = vmul.f32 %v8157_v38, %v8157_v38 }
  0x55   :  { %7827 = vmatpush3.bf16.xpose.msk.msra.mxu1 %vm7996_vm1, %v7825_v52  ;;  %7404 = vmatprep.mubr.msk.f32.mxu0 %vm7946_vm2, %v9361_v8  ;;  %v299_v52 = vmul.f32 %v8097_v26, %v8097_v26 }
  0x56   :  { %7411 = vmatprep.mubr.msk.f32.mxu1 %vm7946_vm2, %v9361_v8  ;;  %7828 = vmatprep.subr.bf16.mxu0 %v7945_v3  ;;  %v7845_v38 = vpack.c.bf16 %v303_v24, %v302_v28  ;;  %v313_v28 = vmul.f32 %v8265_v4, %v8265_v4  ;;  %v359_v4 = vld [vmem:[%s9358_s2 + $0xe8] sm:$0x3f] }
  0x57   :  { %7832 = vmatprep.subr.bf16.mxu1 %v7945_v3  ;;  %v7837_v26 = vpack.c.bf16 %v299_v52, %v298_v13  ;;  %v308_v13 = vmul.f32 %v8201_v47, %v8201_v47  ;;  %v309_v52 = vmul.f32 %v8206_v48, %v8206_v48  ;;  %v51_v47 = vsel %vm50_vm0, %v7978_v0, -inf  ;;  %v357_v48 = vld [vmem:[%s9358_s2 + $0xd8] sm:$0x3f] }
  0x58   :  { %52 = vmax.xlane.f32.xlu0 %v51_v47  ;;  %v192_v47 = vsel %vm50_vm0, %v8071_v19, inf  ;;  %v372_v19 = vld [vmem:[%s9359_s3 + $0x10] sm:$0x3f] }
  0x59   :  { %v7857_v62 = vpack.c.bf16 %v309_v52, %v308_v13  ;;  %v9376_v13 = vpack.c.bf16 %v8236_v56, %v8232_v55  ;;  %v93_v52 = vsel %vm50_vm0, %v8147_v36, -inf  ;;  %v367_v55 = vld [vmem:[%s9358_s2 + $0x128] sm:$0x3f]  ;;  %v162_v56 = vsel %vm50_vm0, %v7978_v0, inf  ;;  %v368_v0 = vld [vmem:[%s9358_s2 + $0x130] sm:$0x3f] }
  0x5b   :  { %7405 = vmatmul.mubr.msk.f32.vlgmr.msra.gmra.mrb[20].mxu0 %vm50_vm0, %v350_v61  ;;  %v304_v61 = vmul.f32 %v8170_v40, %v8170_v40 }
  0x5c   :  { %7412 = vmatmul.mubr.msk.f32.vlgmr.msra.gmra.mrb[20].mxu1 %vm50_vm0, %v351_v23  ;;  %7831 = vmatpush3.bf16.xpose.msk.msra.mxu0 %vm7996_vm1, %v7829_v7  ;;  %v305_v7 = vmul.f32 %v8175_v41, %v8175_v41  ;;  %v355_v23 = vld [vmem:[%s9358_s2 + $0xc8] sm:$0x3f]  ;;  %v306_v41 = vmul.f32 %v8180_v42, %v8180_v42  ;;  %v356_v42 = vld [vmem:[%s9358_s2 + $0xd0] sm:$0x3f] }
  0x5d   :  { %7835 = vmatpush3.bf16.xpose.msk.msra.mxu1 %vm7996_vm1, %v7833_v22  ;;  %7418 = vmatprep.mubr.msk.f32.mxu0 %vm7946_vm2, %v9361_v8  ;;  %v307_v22 = vmul.f32 %v8196_v46, %v8196_v46 }
  0x5e   :  { %7425 = vmatprep.mubr.msk.f32.mxu1 %vm7946_vm2, %v9361_v8  ;;  %7836 = vmatprep.subr.bf16.mxu0 %v7945_v3  ;;  %v7849_v40 = vpack.c.bf16 %v305_v7, %v304_v61  ;;  %v63_v7 = vsel %vm50_vm0, %v8019_v9, -inf }
  0x5f   :  { %7840 = vmatprep.subr.bf16.mxu1 %v7945_v3  ;;  %v7853_v46 = vpack.c.bf16 %v307_v22, %v306_v41  ;;  %v78_v41 = vsel %vm50_vm0, %v8063_v18, -inf  ;;  %v75_v22 = vsel %vm50_vm0, %v8058_v17, -inf }
  0x63   :  { %7419 = vmatmul.mubr.msk.f32.vlgmr.msra.gmra.mrb[22].mxu0 %vm50_vm0, %v352_v25  ;;  %v310_v25 = vmul.f32 %v8245_v59, %v8245_v59  ;;  %v54_v59 = vsel %vm50_vm0, %v7983_v1, -inf }
  0x64   :  { %7426 = vmatmul.mubr.msk.f32.vlgmr.msra.gmra.mrb[22].mxu1 %vm50_vm0, %v353_v58  ;;  %7839 = vmatpush3.bf16.xpose.msk.msra.mxu0 %vm7996_vm1, %v7837_v26  ;;  %v311_v26 = vmul.f32 %v8250_v60, %v8250_v60  ;;  %v60_v58 = vsel %vm50_vm0, %v8003_v6, -inf  ;;  %v358_v60 = vld [vmem:[%s9358_s2 + $0xe0] sm:$0x3f] }
  0x65   :  { %7843 = vmatpush3.bf16.xpose.msk.msra.mxu1 %vm7996_vm1, %v7841_v27  ;;  %7432 = vmatprep.mubr.msk.f32.mxu0 %vm7946_vm2, %v9361_v8  ;;  %v312_v27 = vmul.f32 %v8260_v63, %v8260_v63  ;;  %v66_v63 = vsel %vm50_vm0, %v8024_v10, -inf  ;;  %v183_v10 = vsel %vm50_vm0, %v8035_v12, inf }
  0x66   :  { %7439 = vmatprep.mubr.msk.f32.mxu1 %vm7946_vm2, %v9361_v8  ;;  %7844 = vmatprep.subr.bf16.mxu0 %v7945_v3  ;;  %v7861_v24 = vpack.c.bf16 %v311_v26, %v310_v25  ;;  %v375_v25 = vld [vmem:[%s9359_s3 + $0x28] sm:$0x3f] }
  0x67   :  { %7848 = vmatprep.subr.bf16.mxu1 %v7945_v3  ;;  %61 = vmax.xlane.f32.xlu1 %v60_v58  ;;  %v7865_v61 = vpack.c.bf16 %v313_v28, %v312_v27  ;;  %v376_v28 = vld [vmem:[%s9359_s3 + $0x30] sm:$0x3f] }
  0x68   :  { %55 = vmax.xlane.f32.xlu0 %v54_v59 }
  0x6b   :  { %7433 = vmatmul.mubr.msk.f32.vlgmr.msra.gmra.mrb[24].mxu0 %vm50_vm0, %v354_v31  ;;  %67 = vmax.xlane.f32.xlu1 %v66_v63  ;;  %v72_v31 = vsel %vm50_vm0, %v8035_v12, -inf  ;;  %v198_v12 = vsel %vm50_vm0, %v8113_v29, inf }
  0x6c   :  { %7440 = vmatmul.mubr.msk.f32.vlgmr.msra.gmra.mrb[24].mxu1 %vm50_vm0, %v355_v23  ;;  %7847 = vmatpush3.bf16.xpose.msk.msra.mxu0 %vm7996_vm1, %v7845_v38  ;;  %v360_v38 = vld [vmem:[%s9358_s2 + $0xf0] sm:$0x3f]  ;;  %v69_v23 = vsel %vm50_vm0, %v8030_v11, -inf }
  0x6d   :  { %7851 = vmatpush3.bf16.xpose.msk.msra.mxu1 %vm7996_vm1, %v7849_v40  ;;  %7446 = vmatprep.mubr.msk.f32.mxu0 %vm7946_vm2, %v9361_v8  ;;  %v361_v40 = vld [vmem:[%s9358_s2 + $0xf8] sm:$0x3f] }
  0x6e   :  { %7453 = vmatprep.mubr.msk.f32.mxu1 %vm7946_vm2, %v9361_v8  ;;  %7852 = vmatprep.subr.bf16.mxu0 %v7945_v3 }
  0x6f   :  { %7856 = vmatprep.subr.bf16.mxu1 %v7945_v3  ;;  %64 = vmax.xlane.f32.xlu0 %v63_v7 }
  0x70   :  { %73 = vmax.xlane.f32.xlu1 %v72_v31  ;;  %v379_v31 = vld [vmem:[%s9359_s3 + $0x48] sm:$0x3f] }
  0x73   :  { %7447 = vmatmul.mubr.msk.f32.vlgmr.msra.gmra.mrb[26].mxu0 %vm50_vm0, %v356_v42  ;;  %70 = vmax.xlane.f32.xlu0 %v69_v23  ;;  %v171_v42 = vsel %vm50_vm0, %v8003_v6, inf  ;;  %v369_v6 = vld [vmem:[%s9358_s2 + $0x138] sm:$0x3f] }
  0x74   :  { %7454 = vmatmul.mubr.msk.f32.vlgmr.msra.gmra.mrb[26].mxu1 %vm50_vm0, %v357_v48  ;;  %7855 = vmatpush3.bf16.xpose.msk.msra.mxu0 %vm7996_vm1, %v7853_v46  ;;  %v186_v46 = vsel %vm50_vm0, %v8058_v17, inf  ;;  %v207_v17 = vsel %vm50_vm0, %v8152_v37, inf }
  0x75   :  { %7859 = vmatpush3.bf16.xpose.msk.msra.mxu1 %vm7996_vm1, %v7857_v62  ;;  %7460 = vmatprep.mubr.msk.f32.mxu0 %vm7946_vm2, %v9361_v8 }
  0x76   :  { %7467 = vmatprep.mubr.msk.f32.mxu1 %vm7946_vm2, %v9361_v8  ;;  %7860 = vmatprep.subr.bf16.mxu0 %v7945_v3 }
  0x77   :  { %7864 = vmatprep.subr.bf16.mxu1 %v7945_v3  ;;  %79 = vmax.xlane.f32.xlu1 %v78_v41  ;;  %v380_v41 = vld [vmem:[%s9359_s3 + $0x50] sm:$0x3f] }
  0x78   :  { %76 = vmax.xlane.f32.xlu0 %v75_v22 }
  0x7b   :  { %7461 = vmatmul.mubr.msk.f32.vlgmr.msra.gmra.mrb[28].mxu0 %vm50_vm0, %v358_v60  ;;  %85 = vmax.xlane.f32.xlu1 %v84_v33  ;;  %v377_v60 = vld [vmem:[%s9359_s3 + $0x38] sm:$0x3f] }
  0x7c   :  { %7468 = vmatmul.mubr.msk.f32.vlgmr.msra.gmra.mrb[28].mxu1 %vm50_vm0, %v359_v4  ;;  %7863 = vmatpush3.bf16.xpose.msk.msra.mxu0 %vm7996_vm1, %v7861_v24 }
  0x7d   :  { %7867 = vmatpush3.bf16.xpose.msk.msra.mxu1 %vm7996_vm1, %v7865_v61  ;;  %7474 = vmatprep.mubr.msk.f32.mxu0 %vm7946_vm2, %v9361_v8  ;;  %v378_v61 = vld [vmem:[%s9359_s3 + $0x40] sm:$0x3f] }
  0x7e   :  { %7481 = vmatprep.mubr.msk.f32.mxu1 %vm7946_vm2, %v9361_v8  ;;  %7868 = vmatprep.subr.bf16.mxu0 %v7945_v3 }
  0x7f   :  { %7872 = vmatprep.subr.bf16.mxu1 %v7945_v3  ;;  %82 = vmax.xlane.f32.xlu0 %v81_v35 }
  0x83   :  { %7475 = vmatmul.mubr.msk.f32.vlgmr.msra.gmra.mrb[30].mxu0 %vm50_vm0, %v360_v38  ;;  %88 = vmax.xlane.f32.xlu0 %v87_v45 }
  0x84   :  { %7482 = vmatmul.mubr.msk.f32.vlgmr.msra.gmra.mrb[30].mxu1 %vm50_vm0, %v361_v40  ;;  %7871 = vmatpush3.bf16.xpose.msk.msra.mxu0 %vm7996_vm1, %v7869_v43  ;;  %v9374_v43 = vpack.c.bf16 %v8214_v50, %v8210_v49  ;;  %v365_v49 = vld [vmem:[%s9358_s2 + $0x118] sm:$0x3f]  ;;  %v9375_v50 = vpack.c.bf16 %v8228_v54, %v8218_v51  ;;  %v366_v51 = vld [vmem:[%s9358_s2 + $0x120] sm:$0x3f]  ;;  %v165_v54 = vsel %vm50_vm0, %v7983_v1, inf  ;;  %v9378_v1 = vpack.c.bf16 %v8285_v21, %v8281_v16 }
  0x85   :  { %7875 = vmatpush3.bf16.xpose.msk.msra.mxu1 %vm7996_vm1, %v7873_v44  ;;  %7488 = vmatprep.mubr.msk.f32.mxu0 %vm7946_vm2, %v9361_v8  ;;  %v90_v44 = vsel %vm50_vm0, %v8118_v30, -inf  ;;  %v174_v16 = vsel %vm50_vm0, %v8019_v9, inf  ;;  %v180_v21 = vsel %vm50_vm0, %v8030_v11, inf  ;;  %v189_v9 = vsel %vm50_vm0, %v8063_v18, inf }
  0x86   :  { %7495 = vmatprep.mubr.msk.f32.mxu1 %vm7946_vm2, %v9361_v8  ;;  %7876 = vmatprep.subr.bf16.mxu0 %v7945_v3  ;;  %v201_v11 = vsel %vm50_vm0, %v8118_v30, inf  ;;  %v204_v18 = vsel %vm50_vm0, %v8147_v36, inf  ;;  %v373_v30 = vld [vmem:[%s9359_s3 + $0x18] sm:$0x3f]  ;;  %v374_v36 = vld [vmem:[%s9359_s3 + $0x20] sm:$0x3f] }
  0x87   :  { %7880 = vmatprep.subr.bf16.mxu1 %v7945_v3  ;;  %91 = vmax.xlane.f32.xlu1 %v90_v44 }
  0x88   :  { %94 = vmax.xlane.f32.xlu0 %v93_v52  ;;  %v385_v52 = vld [vmem:[%s9359_s3 + $0x78] sm:$0x3f] }
  0x8b   :  { %7489 = vmatmul.mubr.msk.f32.vlgmr.msra.gmra.mrb[32].mxu0 %vm50_vm0, %v362_v32  ;;  %v381_v32 = vld [vmem:[%s9359_s3 + $0x58] sm:$0x3f] }
  0x8c   :  { %7496 = vmatmul.mubr.msk.f32.vlgmr.msra.gmra.mrb[32].mxu1 %vm50_vm0, %v363_v34  ;;  %7879 = vmatpush3.bf16.xpose.msk.msra.mxu0 %vm7996_vm1, %v7877_v53  ;;  %v96_v53 = vsel %vm50_vm0, %v8152_v37, -inf }
  0x8d   :  { %7883 = vmatpush3.bf16.xpose.msk.msra.mxu1 %vm7996_vm1, %v9374_v43  ;;  %7502 = vmatprep.mubr.msk.f32.mxu0 %vm7946_vm2, %v9361_v8  ;;  %v382_v43 = vld [vmem:[%s9359_s3 + $0x60] sm:$0x3f] }
  0x8e   :  { %7509 = vmatprep.mubr.msk.f32.mxu1 %vm7946_vm2, %v9361_v8  ;;  %7884 = vmatprep.subr.bf16.mxu0 %v7945_v3 }
  0x8f   :  { %7888 = vmatprep.subr.bf16.mxu1 %v7945_v3  ;;  %97 = vmax.xlane.f32.xlu1 %v96_v53  ;;  %v384_v53 = vld [vmem:[%s9359_s3 + $0x70] sm:$0x3f] }
  0x90   :  { %163 = vmin.xlane.f32.xlu0 %v162_v56 }
  0x93   :  { %7503 = vmatmul.mubr.msk.f32.vlgmr.msra.gmra.mrb[34].mxu0 %vm50_vm0, %v364_v39  ;;  %166 = vmin.xlane.f32.xlu1 %v165_v54  ;;  %v383_v39 = vld [vmem:[%s9359_s3 + $0x68] sm:$0x3f] }
  0x94   :  { %7510 = vmatmul.mubr.msk.f32.vlgmr.msra.gmra.mrb[34].mxu1 %vm50_vm0, %v365_v49  ;;  %7887 = vmatpush3.bf16.xpose.msk.msra.mxu0 %vm7996_vm1, %v9375_v50 }
  0x95   :  { %7891 = vmatpush3.bf16.xpose.msk.msra.mxu1 %vm7996_vm1, %v9376_v13  ;;  %7516 = vmatprep.mubr.msk.f32.mxu0 %vm7946_vm2, %v9361_v8 }
  0x96   :  { %7523 = vmatprep.mubr.msk.f32.mxu1 %vm7946_vm2, %v9361_v8  ;;  %7892 = vmatprep.subr.bf16.mxu0 %v7945_v3 }
  0x97   :  { %7896 = vmatprep.subr.bf16.mxu1 %v7945_v3  ;;  %v9377_v3 = vpack.c.bf16 %v8277_v15, %v8273_v14  ;;  %172 = vmin.xlane.f32.xlu1 %v171_v42  ;;  %v370_v14 = vld [vmem:[%s9359_s3] sm:$0x3f]  ;;  %v371_v15 = vld [vmem:[%s9359_s3 + $0x8] sm:$0x3f] }
  0x98   :  { %169 = vmin.xlane.f32.xlu0 %v168_v5 }
  0x9b   :  { %7517 = vmatmul.mubr.msk.f32.vlgmr.msra.gmra.mrb[36].mxu0 %vm50_vm0, %v366_v51  ;;  %178 = vmin.xlane.f32.xlu1 %v177_v2 }
  0x9c   :  { %7524 = vmatmul.mubr.msk.f32.vlgmr.msra.gmra.mrb[36].mxu1 %vm50_vm0, %v367_v55  ;;  %7895 = vmatpush3.bf16.xpose.msk.msra.mxu0 %vm7996_vm1, %v9377_v3  ;;  %v386_v3 = vld [vmem:[%s9359_s3 + $0x80] sm:$0x3f] }
  0x9d   :  { %7899 = vmatpush3.bf16.xpose.msk.msra.mxu1 %vm7996_vm1, %v9378_v1  ;;  %7530 = vmatprep.mubr.msk.f32.mxu0 %vm7946_vm2, %v9361_v8  ;;  %v387_v1 = vld [vmem:[%s9359_s3 + $0x88] sm:$0x3f] }
  0x9e   :  { %7537 = vmatprep.mubr.msk.f32.mxu1 %vm7946_vm2, %v9361_v8  ;;  %7540 = vmatprep.subr.mxu0 %v9361_v8 }
  0x9f   :  { %7545 = vmatprep.subr.mxu1 %v9361_v8  ;;  %175 = vmin.xlane.f32.xlu0 %v174_v16 }
  0xa0   :  { %184 = vmin.xlane.f32.xlu1 %v183_v10 }
  0xa3   :  { %7531 = vmatmul.mubr.msk.f32.vlgmr.msra.gmra.mrb[38].mxu0 %vm50_vm0, %v368_v0  ;;  %181 = vmin.xlane.f32.xlu0 %v180_v21  ;;  %v390_v21 = vld [vmem:[%s9359_s3 + $0xa0] sm:$0x3f] }
  0xa4   :  { %7538 = vmatmul.mubr.msk.f32.vlgmr.msra.gmra.mrb[38].mxu1 %vm50_vm0, %v369_v6  ;;  %7541 = vmatpush3.xpose.msk.msra.mxu0 %vm50_vm0, %v370_v14  ;;  %v388_v6 = vld [vmem:[%s9359_s3 + $0x90] sm:$0x3f] }
  0xa5   :  { %7542 = vmatprep.mubr.msk.f32.mxu0 %vm7946_vm2, %v9361_v8  ;;  %7546 = vmatpush3.xpose.msk.msra.mxu1 %vm50_vm0, %v371_v15  ;;  %v389_v15 = vld [vmem:[%s9359_s3 + $0x98] sm:$0x3f] }
  0xa6   :  { %7547 = vmatprep.mubr.msk.f32.mxu1 %vm7946_vm2, %v9361_v8  ;;  %7550 = vmatprep.subr.mxu0 %v9361_v8 }
  0xa7   :  { %7555 = vmatprep.subr.mxu1 %v9361_v8  ;;  %190 = vmin.xlane.f32.xlu1 %v189_v9 }
  0xa8   :  { %187 = vmin.xlane.f32.xlu0 %v186_v46  ;;  %v391_v46 = vld [vmem:[%s9359_s3 + $0xa8] sm:$0x3f] }
  0xab   :  { %196 = vmin.xlane.f32.xlu1 %v195_v57 }
  0xac   :  { %193 = vmin.xlane.f32.xlu0 %v192_v47 }
  0xaf   :  { %202 = vmin.xlane.f32.xlu1 %v201_v11 }
  0xb0   :  { %199 = vmin.xlane.f32.xlu0 %v198_v12  ;;  %v392_v12 = vld [vmem:[%s9359_s3 + $0xb0] sm:$0x3f] }
  0xb3   :  { %208 = vmin.xlane.f32.xlu1 %v207_v17 }
  0xb4   :  { %205 = vmin.xlane.f32.xlu0 %v204_v18  ;;  %v393_v18 = vld [vmem:[%s9359_s3 + $0xb8] sm:$0x3f] }
  0xde   :  { %v485_v20 = vpop.f32.mrb[0].mxu0 }
  0xdf   :  { %v7266_v29 = vpop.f32.mrb[1].mxu0  ;;  %7543 = vmatmul.mubr.msk.f32.vlgmr.msra.gmra.mrb[40].mxu0 %vm50_vm0, %v485_v20  ;;  %v564_v48 = vpop.f32.mrb[0].mxu1 }
  0xe0   :  { %v7273_v62 = vpop.f32.mrb[1].mxu1  ;;  %7548 = vmatmul.mubr.msk.f32.vlgmr.msra.gmra.mrb[40].mxu1 %vm50_vm0, %v564_v48  ;;  %7551 = vmatpush3.xpose.msk.msra.mxu0 %vm50_vm0, %v372_v19  ;;  %v394_v29 = vld [vmem:[%s9359_s3 + $0xc0] sm:$0x3f] }
  0xe1   :  { %7552 = vmatprep.mubr.msk.f32.mxu0 %vm7946_vm2, %v9361_v8  ;;  %7556 = vmatpush3.xpose.msk.msra.mxu1 %vm50_vm0, %v373_v30  ;;  %v395_v62 = vld [vmem:[%s9359_s3 + $0xc8] sm:$0x3f] }
  0xe2   :  { %7557 = vmatprep.mubr.msk.f32.mxu1 %vm7946_vm2, %v9361_v8  ;;  %7560 = vmatprep.subr.mxu0 %v9361_v8 }
  0xe3   :  { %7565 = vmatprep.subr.mxu1 %v9361_v8 }
  0xe6   :  { %v643_v37 = vpop.f32.mrb[2].mxu0 }
  0xe7   :  { %v7280_v26 = vpop.f32.mrb[3].mxu0  ;;  %7553 = vmatmul.mubr.msk.f32.vlgmr.msra.gmra.mrb[42].mxu0 %vm50_vm0, %v643_v37  ;;  %v722_v58 = vpop.f32.mrb[2].mxu1 }
  0xe8   :  { %v7287_v27 = vpop.f32.mrb[3].mxu1  ;;  %7558 = vmatmul.mubr.msk.f32.vlgmr.msra.gmra.mrb[42].mxu1 %vm50_vm0, %v722_v58  ;;  %7561 = vmatpush3.xpose.msk.msra.mxu0 %vm50_vm0, %v374_v36  ;;  %v396_v26 = vld [vmem:[%s9359_s3 + $0xd0] sm:$0x3f] }
  0xe9   :  { %7562 = vmatprep.mubr.msk.f32.mxu0 %vm7946_vm2, %v9361_v8  ;;  %7566 = vmatpush3.xpose.msk.msra.mxu1 %vm50_vm0, %v375_v25  ;;  %v397_v27 = vld [vmem:[%s9359_s3 + $0xd8] sm:$0x3f] }
  0xea   :  { %7567 = vmatprep.mubr.msk.f32.mxu1 %vm7946_vm2, %v9361_v8  ;;  %7570 = vmatprep.subr.mxu0 %v9361_v8 }
  0xeb   :  { %7575 = vmatprep.subr.mxu1 %v9361_v8 }
  0xee   :  { %v801_v59 = vpop.f32.mrb[4].mxu0 }
  0xef   :  { %v7294_v24 = vpop.f32.mrb[5].mxu0  ;;  %7563 = vmatmul.mubr.msk.f32.vlgmr.msra.gmra.mrb[44].mxu0 %vm50_vm0, %v801_v59  ;;  %v880_v63 = vpop.f32.mrb[4].mxu1 }
  0xf0   :  { %v7301_v4 = vpop.f32.mrb[5].mxu1  ;;  %7568 = vmatmul.mubr.msk.f32.vlgmr.msra.gmra.mrb[44].mxu1 %vm50_vm0, %v880_v63  ;;  %7571 = vmatpush3.xpose.msk.msra.mxu0 %vm50_vm0, %v376_v28  ;;  %v398_v24 = vld [vmem:[%s9359_s3 + $0xe0] sm:$0x3f] }
  0xf1   :  { %7572 = vmatprep.mubr.msk.f32.mxu0 %vm7946_vm2, %v9361_v8  ;;  %7576 = vmatpush3.xpose.msk.msra.mxu1 %vm50_vm0, %v377_v60  ;;  %v399_v4 = vld [vmem:[%s9359_s3 + $0xe8] sm:$0x3f] }
  0xf2   :  { %7577 = vmatprep.mubr.msk.f32.mxu1 %vm7946_vm2, %v9361_v8  ;;  %7580 = vmatprep.subr.mxu0 %v9361_v8 }
  0xf3   :  { %7585 = vmatprep.subr.mxu1 %v9361_v8 }
  0xf6   :  { %v959_v7 = vpop.f32.mrb[6].mxu0 }
  0xf7   :  { %v7308_v38 = vpop.f32.mrb[7].mxu0  ;;  %7573 = vmatmul.mubr.msk.f32.vlgmr.msra.gmra.mrb[46].mxu0 %vm50_vm0, %v959_v7  ;;  %v1038_v23 = vpop.f32.mrb[6].mxu1 }
  0xf8   :  { %v7315_v40 = vpop.f32.mrb[7].mxu1  ;;  %7578 = vmatmul.mubr.msk.f32.vlgmr.msra.gmra.mrb[46].mxu1 %vm50_vm0, %v1038_v23  ;;  %7581 = vmatpush3.xpose.msk.msra.mxu0 %vm50_vm0, %v378_v61  ;;  %v400_v38 = vld [vmem:[%s9359_s3 + $0xf0] sm:$0x3f] }
  0xf9   :  { %7586 = vmatpush3.xpose.msk.msra.mxu1 %vm50_vm0, %v379_v31  ;;  %7582 = vmatprep.mubr.msk.f32.mxu0 %vm7946_vm2, %v9361_v8  ;;  %v401_v40 = vld [vmem:[%s9359_s3 + $0xf8] sm:$0x3f] }
  0xfa   :  { %7587 = vmatprep.mubr.msk.f32.mxu1 %vm7946_vm2, %v9361_v8  ;;  %7590 = vmatprep.subr.mxu0 %v9361_v8 }
  0xfb   :  { %7595 = vmatprep.subr.mxu1 %v9361_v8 }
  0xfe   :  { %v1117_v22 = vpop.f32.mrb[8].mxu0 }
  0xff   :  { %v1196_v33 = vpop.f32.mrb[8].mxu1  ;;  %v7322_v34 = vpop.f32.mrb[9].mxu0  ;;  %7583 = vmatmul.mubr.msk.f32.vlgmr.msra.gmra.mrb[48].mxu0 %vm50_vm0, %v1117_v22 }
 0x100   :  { %7588 = vmatmul.mubr.msk.f32.vlgmr.msra.gmra.mrb[48].mxu1 %vm50_vm0, %v1196_v33  ;;  %v7329_v35 = vpop.f32.mrb[9].mxu1  ;;  %7591 = vmatpush3.xpose.msk.msra.mxu0 %vm50_vm0, %v380_v41  ;;  %v402_v33 = vld [vmem:[%s9359_s3 + $0x100] sm:$0x3f] }
 0x101   :  { %7596 = vmatpush3.xpose.msk.msra.mxu1 %vm50_vm0, %v381_v32  ;;  %7592 = vmatprep.mubr.msk.f32.mxu0 %vm7946_vm2, %v9361_v8  ;;  %v403_v35 = vld [vmem:[%s9359_s3 + $0x108] sm:$0x3f] }
 0x102   :  { %7597 = vmatprep.mubr.msk.f32.mxu1 %vm7946_vm2, %v9361_v8  ;;  %7600 = vmatprep.subr.mxu0 %v9361_v8 }
 0x103   :  { %7605 = vmatprep.subr.mxu1 %v9361_v8 }
 0x106   :  { %v1275_v44 = vpop.f32.mrb[10].mxu0 }
 0x107   :  { %v1354_v45 = vpop.f32.mrb[10].mxu1  ;;  %v7336_v49 = vpop.f32.mrb[11].mxu0  ;;  %7593 = vmatmul.mubr.msk.f32.vlgmr.msra.gmra.mrb[50].mxu0 %vm50_vm0, %v1275_v44 }
 0x108   :  { %7598 = vmatmul.mubr.msk.f32.vlgmr.msra.gmra.mrb[50].mxu1 %vm50_vm0, %v1354_v45  ;;  %v7343_v50 = vpop.f32.mrb[11].mxu1  ;;  %7601 = vmatpush3.xpose.msk.msra.mxu0 %vm50_vm0, %v382_v43  ;;  %v404_v45 = vld [vmem:[%s9359_s3 + $0x110] sm:$0x3f] }
 0x109   :  { %7606 = vmatpush3.xpose.msk.msra.mxu1 %vm50_vm0, %v383_v39  ;;  %7602 = vmatprep.mubr.msk.f32.mxu0 %vm7946_vm2, %v9361_v8  ;;  %v405_v50 = vld [vmem:[%s9359_s3 + $0x118] sm:$0x3f] }
 0x10a   :  { %7607 = vmatprep.mubr.msk.f32.mxu1 %vm7946_vm2, %v9361_v8  ;;  %7610 = vmatprep.subr.mxu0 %v9361_v8 }
 0x10b   :  { %7615 = vmatprep.subr.mxu1 %v9361_v8 }
 0x10e   :  { %v1433_v13 = vpop.f32.mrb[12].mxu0 }
 0x10f   :  { %v1512_v51 = vpop.f32.mrb[12].mxu1  ;;  %v7350_v54 = vpop.f32.mrb[13].mxu0  ;;  %7603 = vmatmul.mubr.msk.f32.vlgmr.msra.gmra.mrb[52].mxu0 %vm50_vm0, %v1433_v13 }
 0x110   :  { %7608 = vmatmul.mubr.msk.f32.vlgmr.msra.gmra.mrb[52].mxu1 %vm50_vm0, %v1512_v51  ;;  %v7357_v55 = vpop.f32.mrb[13].mxu1  ;;  %7611 = vmatpush3.xpose.msk.msra.mxu0 %vm50_vm0, %v384_v53  ;;  %v406_v51 = vld [vmem:[%s9359_s3 + $0x120] sm:$0x3f] }
 0x111   :  { %7616 = vmatpush3.xpose.msk.msra.mxu1 %vm50_vm0, %v385_v52  ;;  %7612 = vmatprep.mubr.msk.f32.mxu0 %vm7946_vm2, %v9361_v8  ;;  %v407_v55 = vld [vmem:[%s9359_s3 + $0x128] sm:$0x3f] }
 0x112   :  { %7617 = vmatprep.mubr.msk.f32.mxu1 %vm7946_vm2, %v9361_v8  ;;  %7620 = vmatprep.subr.mxu0 %v9361_v8 }
 0x113   :  { %7625 = vmatprep.subr.mxu1 %v9361_v8 }
 0x116   :  { %v1591_v56 = vpop.f32.mrb[14].mxu0 }
 0x117   :  { %v1670_v42 = vpop.f32.mrb[14].mxu1  ;;  %v7364_v0 = vpop.f32.mrb[15].mxu0  ;;  %7613 = vmatmul.mubr.msk.f32.vlgmr.msra.gmra.mrb[54].mxu0 %vm50_vm0, %v1591_v56 }
 0x118   :  { %7618 = vmatmul.mubr.msk.f32.vlgmr.msra.gmra.mrb[54].mxu1 %vm50_vm0, %v1670_v42  ;;  %v7371_v5 = vpop.f32.mrb[15].mxu1  ;;  %7621 = vmatpush3.xpose.msk.msra.mxu0 %vm50_vm0, %v386_v3  ;;  %v408_v42 = vld [vmem:[%s9359_s3 + $0x130] sm:$0x3f] }
 0x119   :  { %7626 = vmatpush3.xpose.msk.msra.mxu1 %vm50_vm0, %v387_v1  ;;  %7622 = vmatprep.mubr.msk.f32.mxu0 %vm7946_vm2, %v9361_v8  ;;  %v409_v5 = vld [vmem:[%s9359_s3 + $0x138] sm:$0x3f]  ;;  %s7949_s3 = smov [#allocation2]  }
 0x11a   :  { %7627 = vmatprep.mubr.msk.f32.mxu1 %vm7946_vm2, %v9361_v8  ;;  %7630 = vmatprep.subr.mxu0 %v9361_v8  ;;  %s6852_s16 = sshll.u32 %s7949_s3, 4  ;;  %s6853_s16 = int_to_ptr.vmem [resolvable:$true] %s6852_s16 }
 0x11b   :  { %7635 = vmatprep.subr.mxu1 %v9361_v8  ;;  %s7921_s0 = scalar_lea.vmem %s6853_s16, 16  ;;  %s7925_s17 = scalar_lea.vmem %s6853_s16, 32 }
 0x11c   :  { %p7922_p0 = scmp.ne.s32.totalorder %s6853_s16, %s7921_s0  ;;  %p7926_p1 = scmp.lt.s32.totalorder %s6853_s16, %s6853_s16 }
 0x11d   :  { %p7927_p2 = scmp.lt.s32.totalorder %s7925_s17, %s7921_s0 }
 0x11e   :  { %v1749_v14 = vpop.f32.mrb[16].mxu0 }
 0x11f   :  { %v1828_v2 = vpop.f32.mrb[16].mxu1  ;;  %v7378_v16 = vpop.f32.mrb[17].mxu0  ;;  %7623 = vmatmul.mubr.msk.f32.vlgmr.msra.gmra.mrb[56].mxu0 %vm50_vm0, %v1749_v14  ;;  %p7928_p3 = por %p7927_p2, %p7926_p1 }
 0x120   :  { %7628 = vmatmul.mubr.msk.f32.vlgmr.msra.gmra.mrb[56].mxu1 %vm50_vm0, %v1828_v2  ;;  %v7385_v10 = vpop.f32.mrb[17].mxu1  ;;  %7631 = vmatpush3.xpose.msk.msra.mxu0 %vm50_vm0, %v388_v6 }
 0x121   :  { %7636 = vmatpush3.xpose.msk.msra.mxu1 %vm50_vm0, %v389_v15  ;;  %7632 = vmatprep.mubr.msk.f32.mxu0 %vm7946_vm2, %v9361_v8  ;;  %p7929_p4 = pnand %p7928_p3, %p7922_p0 }
 0x122   :  { %7637 = vmatprep.mubr.msk.f32.mxu1 %vm7946_vm2, %v9361_v8  ;;  %7640 = vmatprep.subr.mxu0 %v9361_v8 }
 0x123   :  { %7645 = vmatprep.subr.mxu1 %v9361_v8 }
 0x126   :  { %v1907_v9 = vpop.f32.mrb[18].mxu0 }
 0x127   :  { %v1986_v57 = vpop.f32.mrb[18].mxu1  ;;  %v7392_v47 = vpop.f32.mrb[19].mxu0  ;;  %7633 = vmatmul.mubr.msk.f32.vlgmr.msra.gmra.mrb[58].mxu0 %vm50_vm0, %v1907_v9 }
 0x128   :  { %7638 = vmatmul.mubr.msk.f32.vlgmr.msra.gmra.mrb[58].mxu1 %vm50_vm0, %v1986_v57  ;;  %v7399_v11 = vpop.f32.mrb[19].mxu1  ;;  %7641 = vmatpush3.xpose.msk.msra.mxu0 %vm50_vm0, %v390_v21  ;;  %v59_v9 = vpop.xlane.xlu1 %58 }
 0x129   :  { %7646 = vmatpush3.xpose.msk.msra.mxu1 %vm50_vm0, %v391_v46  ;;  %7642 = vmatprep.mubr.msk.f32.mxu0 %vm7946_vm2, %v9361_v8  ;;  %v53_v46 = vpop.xlane.xlu0 %52 }
 0x12a   :  { %7647 = vmatprep.mubr.msk.f32.mxu1 %vm7946_vm2, %v9361_v8  ;;  %7650 = vmatprep.subr.mxu0 %v9361_v8 }
 0x12b   :  { %7655 = vmatprep.subr.mxu1 %v9361_v8 }
 0x12c   :  { %v62_v57 = vpop.xlane.xlu1 %61 }
 0x12d   :  { %v56_v47 = vpop.xlane.xlu0 %55 }
 0x12e   :  { %v2065_v17 = vpop.f32.mrb[20].mxu0 }
 0x12f   :  { %v2144_v19 = vpop.f32.mrb[20].mxu1  ;;  %v7406_v20 = vpop.f32.mrb[21].mxu0  ;;  %7643 = vmatmul.mubr.msk.f32.vlgmr.msra.gmra.mrb[60].mxu0 %vm50_vm0, %v2065_v17 }
 0x130   :  { %7648 = vmatmul.mubr.msk.f32.vlgmr.msra.gmra.mrb[60].mxu1 %vm50_vm0, %v2144_v19  ;;  %v7413_v30 = vpop.f32.mrb[21].mxu1  ;;  %7651 = vmatpush3.xpose.msk.msra.mxu0 %vm50_vm0, %v392_v12  ;;  %v68_v11 = vpop.xlane.xlu1 %67 }
 0x131   :  { %7656 = vmatpush3.xpose.msk.msra.mxu1 %vm50_vm0, %v393_v18  ;;  %7652 = vmatprep.mubr.msk.f32.mxu0 %vm7946_vm2, %v9361_v8  ;;  %v65_v12 = vpop.xlane.xlu0 %64 }
 0x132   :  { %7657 = vmatprep.mubr.msk.f32.mxu1 %vm7946_vm2, %v9361_v8  ;;  %7660 = vmatprep.subr.mxu0 %v9361_v8 }
 0x133   :  { %7665 = vmatprep.subr.mxu1 %v9361_v8 }
 0x134   :  { %v74_v17 = vpop.xlane.xlu1 %73 }
 0x135   :  { %v71_v18 = vpop.xlane.xlu0 %70 }
 0x136   :  { %v2223_v48 = vpop.f32.mrb[22].mxu0 }
 0x137   :  { %v2302_v36 = vpop.f32.mrb[22].mxu1  ;;  %v7420_v37 = vpop.f32.mrb[23].mxu0  ;;  %7653 = vmatmul.mubr.msk.f32.vlgmr.msra.gmra.mrb[62].mxu0 %vm50_vm0, %v2223_v48 }
 0x138   :  { %7658 = vmatmul.mubr.msk.f32.vlgmr.msra.gmra.mrb[62].mxu1 %vm50_vm0, %v2302_v36  ;;  %v7427_v25 = vpop.f32.mrb[23].mxu1  ;;  %7661 = vmatpush3.xpose.msk.msra.mxu0 %vm50_vm0, %v394_v29  ;;  %v80_v19 = vpop.xlane.xlu1 %79 }
 0x139   :  { %7666 = vmatpush3.xpose.msk.msra.mxu1 %vm50_vm0, %v395_v62  ;;  %7662 = vmatprep.mubr.msk.f32.mxu0 %vm7946_vm2, %v9361_v8  ;;  %v77_v20 = vpop.xlane.xlu0 %76 }
 0x13a   :  { %7667 = vmatprep.mubr.msk.f32.mxu1 %vm7946_vm2, %v9361_v8  ;;  %7670 = vmatprep.subr.mxu0 %v9361_v8 }
 0x13b   :  { %7675 = vmatprep.subr.mxu1 %v9361_v8 }
 0x13c   :  { %v86_v30 = vpop.xlane.xlu1 %85 }
 0x13d   :  { %v83_v29 = vpop.xlane.xlu0 %82 }
 0x13e   :  { %v2381_v58 = vpop.f32.mrb[24].mxu0 }
 0x13f   :  { %v2460_v28 = vpop.f32.mrb[24].mxu1  ;;  %v7434_v59 = vpop.f32.mrb[25].mxu0  ;;  %7663 = vmatmul.mubr.msk.f32.vlgmr.msra.gmra.mrb[64].mxu0 %vm50_vm0, %v2381_v58 }
 0x140   :  { %7668 = vmatmul.mubr.msk.f32.vlgmr.msra.gmra.mrb[64].mxu1 %vm50_vm0, %v2460_v28  ;;  %v7441_v60 = vpop.f32.mrb[25].mxu1  ;;  %7671 = vmatpush3.xpose.msk.msra.mxu0 %vm50_vm0, %v396_v26  ;;  %v92_v48 = vpop.xlane.xlu1 %91 }
 0x141   :  { %7676 = vmatpush3.xpose.msk.msra.mxu1 %vm50_vm0, %v397_v27  ;;  %7672 = vmatprep.mubr.msk.f32.mxu0 %vm7946_vm2, %v9361_v8  ;;  %v89_v62 = vpop.xlane.xlu0 %88 }
 0x142   :  { %7677 = vmatprep.mubr.msk.f32.mxu1 %vm7946_vm2, %v9361_v8  ;;  %7680 = vmatprep.subr.mxu0 %v9361_v8 }
 0x143   :  { %7685 = vmatprep.subr.mxu1 %v9361_v8 }
 0x144   :  { %v98_v36 = vpop.xlane.xlu1 %97 }
 0x145   :  { %v95_v37 = vpop.xlane.xlu0 %94 }
 0x146   :  { %v2539_v63 = vpop.f32.mrb[26].mxu0 }
 0x147   :  { %v2618_v61 = vpop.f32.mrb[26].mxu1  ;;  %v7448_v7 = vpop.f32.mrb[27].mxu0  ;;  %7673 = vmatmul.mubr.msk.f32.vlgmr.msra.gmra.mrb[66].mxu0 %vm50_vm0, %v2539_v63 }
 0x148   :  { %7678 = vmatmul.mubr.msk.f32.vlgmr.msra.gmra.mrb[66].mxu1 %vm50_vm0, %v2618_v61  ;;  %v7455_v31 = vpop.f32.mrb[27].mxu1  ;;  %7681 = vmatpush3.xpose.msk.msra.mxu0 %vm50_vm0, %v398_v24  ;;  %v9085_v25 = vpop.xlane.xlu1 %166 }
 0x149   :  { %7686 = vmatpush3.xpose.msk.msra.mxu1 %vm50_vm0, %v399_v4  ;;  %7682 = vmatprep.mubr.msk.f32.mxu0 %vm7946_vm2, %v9361_v8  ;;  %v9087_v26 = vpop.xlane.xlu0 %163 }
 0x14a   :  { %7687 = vmatprep.mubr.msk.f32.mxu1 %vm7946_vm2, %v9361_v8  ;;  %7690 = vmatprep.subr.mxu0 %v9361_v8 }
 0x14b   :  { %7695 = vmatprep.subr.mxu1 %v9361_v8 }
 0x14c   :  { %v9089_v59 = vpop.xlane.xlu1 %172 }
 0x14d   :  { %v9091_v24 = vpop.xlane.xlu0 %169 }
 0x14e   :  { %v2697_v23 = vpop.f32.mrb[28].mxu0 }
 0x14f   :  { %v2776_v41 = vpop.f32.mrb[28].mxu1  ;;  %v7462_v22 = vpop.f32.mrb[29].mxu0  ;;  %7683 = vmatmul.mubr.msk.f32.vlgmr.msra.gmra.mrb[68].mxu0 %vm50_vm0, %v2697_v23 }
 0x150   :  { %7688 = vmatmul.mubr.msk.f32.vlgmr.msra.gmra.mrb[68].mxu1 %vm50_vm0, %v2776_v41  ;;  %v7469_v32 = vpop.f32.mrb[29].mxu1  ;;  %7691 = vmatpush3.xpose.msk.msra.mxu0 %vm50_vm0, %v400_v38  ;;  %v9093_v63 = vpop.xlane.xlu1 %178 }
 0x151   :  { %7696 = vmatpush3.xpose.msk.msra.mxu1 %vm50_vm0, %v401_v40  ;;  %7692 = vmatprep.mubr.msk.f32.mxu0 %vm7946_vm2, %v9361_v8  ;;  %v176_v31 = vpop.xlane.xlu0 %175 }
 0x152   :  { %7697 = vmatprep.mubr.msk.f32.mxu1 %vm7946_vm2, %v9361_v8  ;;  %7700 = vmatprep.subr.mxu0 %v9361_v8 }
 0x153   :  { %7705 = vmatprep.subr.mxu1 %v9361_v8 }
 0x154   :  { %v185_v23 = vpop.xlane.xlu1 %184 }
 0x155   :  { %v182_v40 = vpop.xlane.xlu0 %181 }
 0x156   :  { %v2855_v34 = vpop.f32.mrb[30].mxu0 }
 0x157   :  { %v2934_v43 = vpop.f32.mrb[30].mxu1  ;;  %v7476_v44 = vpop.f32.mrb[31].mxu0  ;;  %7693 = vmatmul.mubr.msk.f32.vlgmr.msra.gmra.mrb[70].mxu0 %vm50_vm0, %v2855_v34 }
 0x158   :  { %7698 = vmatmul.mubr.msk.f32.vlgmr.msra.gmra.mrb[70].mxu1 %vm50_vm0, %v2934_v43  ;;  %v7483_v39 = vpop.f32.mrb[31].mxu1  ;;  %7701 = vmatpush3.xpose.msk.msra.mxu0 %vm50_vm0, %v402_v33  ;;  %v191_v34 = vpop.xlane.xlu1 %190  ;;  %v106_v43 = vmax.f32 %v59_v9, %v62_v57  ;;  %v99_v44 = vmax.f32 %v53_v46, %v56_v47 }
 0x159   :  { %7706 = vmatpush3.xpose.msk.msra.mxu1 %vm50_vm0, %v403_v35  ;;  %7702 = vmatprep.mubr.msk.f32.mxu0 %vm7946_vm2, %v9361_v8  ;;  %v188_v35 = vpop.xlane.xlu0 %187 }
 0x15a   :  { %7707 = vmatprep.mubr.msk.f32.mxu1 %vm7946_vm2, %v9361_v8  ;;  %7710 = vmatprep.subr.mxu0 %v9361_v8 }
 0x15b   :  { %7715 = vmatprep.subr.mxu1 %v9361_v8 }
 0x15e   :  { %v3013_v49 = vpop.f32.mrb[32].mxu0 }
 0x15f   :  { %v3092_v53 = vpop.f32.mrb[32].mxu1  ;;  %v7490_v13 = vpop.f32.mrb[33].mxu0  ;;  %7703 = vmatmul.mubr.msk.f32.vlgmr.msra.gmra.mrb[72].mxu0 %vm50_vm0, %v3013_v49 }
 0x160   :  { %7708 = vmatmul.mubr.msk.f32.vlgmr.msra.gmra.mrb[72].mxu1 %vm50_vm0, %v3092_v53  ;;  %v7497_v52 = vpop.f32.mrb[33].mxu1  ;;  %7711 = vmatpush3.xpose.msk.msra.mxu0 %vm50_vm0, %v404_v45  ;;  %v113_v45 = vmax.f32 %v65_v12, %v68_v11  ;;  %v197_v53 = vpop.xlane.xlu1 %196 }
 0x161   :  { %7716 = vmatpush3.xpose.msk.msra.mxu1 %vm50_vm0, %v405_v50  ;;  %7712 = vmatprep.mubr.msk.f32.mxu0 %vm7946_vm2, %v9361_v8  ;;  %v107_v52 = vrot.slane %v106_v43, 4 }
 0x162   :  { %7717 = vmatprep.mubr.msk.f32.mxu1 %vm7946_vm2, %v9361_v8  ;;  %7720 = vmatprep.subr.mxu0 %v9361_v8 }
 0x163   :  { %7725 = vmatprep.subr.mxu1 %v9361_v8 }
 0x166   :  { %v3171_v54 = vpop.f32.mrb[34].mxu0 }
 0x167   :  { %v3250_v3 = vpop.f32.mrb[34].mxu1  ;;  %v7504_v56 = vpop.f32.mrb[35].mxu0  ;;  %7713 = vmatmul.mubr.msk.f32.vlgmr.msra.gmra.mrb[74].mxu0 %vm50_vm0, %v3171_v54 }
 0x168   :  { %7718 = vmatmul.mubr.msk.f32.vlgmr.msra.gmra.mrb[74].mxu1 %vm50_vm0, %v3250_v3  ;;  %v7511_v1 = vpop.f32.mrb[35].mxu1  ;;  %7721 = vmatpush3.xpose.msk.msra.mxu0 %vm50_vm0, %v406_v51  ;;  %v100_v51 = vrot.slane %v99_v44, 4  ;;  %v194_v54 = vpop.xlane.xlu0 %193  ;;  %v120_v3 = vmax.f32 %v71_v18, %v74_v17  ;;  %v127_v56 = vmax.f32 %v77_v20, %v80_v19 }
 0x169   :  { %7726 = vmatpush3.xpose.msk.msra.mxu1 %vm50_vm0, %v407_v55  ;;  %7722 = vmatprep.mubr.msk.f32.mxu0 %vm7946_vm2, %v9361_v8  ;;  %v114_v55 = vrot.slane %v113_v45, 4  ;;  %v134_v1 = vmax.f32 %v83_v29, %v86_v30 }
 0x16a   :  { %7727 = vmatprep.mubr.msk.f32.mxu1 %vm7946_vm2, %v9361_v8  ;;  %7730 = vmatprep.subr.mxu0 %v9361_v8  ;;  %v121_v57 = vrot.slane %v120_v3, 4  ;;  %v128_v19 = vrot.slane %v127_v56, 4 }
 0x16b   :  { %7735 = vmatprep.subr.mxu1 %v9361_v8  ;;  %v135_v20 = vrot.slane %v134_v1, 4 }
 0x16c   :  { %v200_v11 = vpop.xlane.xlu0 %199 }
 0x16e   :  { %v3329_v0 = vpop.f32.mrb[36].mxu0 }
 0x16f   :  { %v3408_v6 = vpop.f32.mrb[36].mxu1  ;;  %v7518_v14 = vpop.f32.mrb[37].mxu0  ;;  %7723 = vmatmul.mubr.msk.f32.vlgmr.msra.gmra.mrb[76].mxu0 %vm50_vm0, %v3329_v0  ;;  %v108_v0 = vmax.f32 %v106_v43, %v107_v52  ;;  %v217_v43 = vmin.f32 %v9091_v24, %v9089_v59 }
 0x170   :  { %7728 = vmatmul.mubr.msk.f32.vlgmr.msra.gmra.mrb[76].mxu1 %vm50_vm0, %v3408_v6  ;;  %v7525_v15 = vpop.f32.mrb[37].mxu1  ;;  %7731 = vmatpush3.xpose.msk.msra.mxu0 %vm50_vm0, %v408_v42  ;;  %v141_v42 = vmax.f32 %v89_v62, %v92_v48  ;;  %v148_v6 = vmax.f32 %v95_v37, %v98_v36  ;;  %v203_v14 = vpop.xlane.xlu1 %202 }
 0x171   :  { %7736 = vmatpush3.xpose.msk.msra.mxu1 %vm50_vm0, %v409_v5  ;;  %7732 = vmatprep.mubr.msk.f32.mxu0 %vm7946_vm2, %v9361_v8  ;;  %v101_v5 = vmax.f32 %v99_v44, %v100_v51  ;;  %v109_v36 = vrot.slane %v108_v0, 2  ;;  %v224_v44 = vmin.f32 %v176_v31, %v9093_v63  ;;  %v245_v31 = vmin.f32 %v194_v54, %v197_v53 }
 0x172   :  { %7737 = vmatprep.mubr.msk.f32.mxu1 %vm7946_vm2, %v9361_v8  ;;  %v142_v30 = vrot.slane %v141_v42, 4  ;;  %v149_v48 = vrot.slane %v148_v6, 4 }
 0x173   :  { %v102_v37 = vrot.slane %v101_v5, 2 }
 0x176   :  { %v3487_v2 = vpop.f32.mrb[38].mxu0 }
 0x177   :  { %v3566_v16 = vpop.f32.mrb[38].mxu1  ;;  %v7532_v10 = vpop.f32.mrb[39].mxu0  ;;  %7733 = vmatmul.mubr.msk.f32.vlgmr.msra.gmra.mrb[78].mxu0 %vm50_vm0, %v3487_v2  ;;  %v115_v2 = vmax.f32 %v113_v45, %v114_v55 }
 0x178   :  { %7738 = vmatmul.mubr.msk.f32.vlgmr.msra.gmra.mrb[78].mxu1 %vm50_vm0, %v3566_v16  ;;  %v7539_v21 = vpop.f32.mrb[39].mxu1  ;;  %v206_v45 = vpop.xlane.xlu0 %205 }
 0x1b2   :  { %v3642_v58 = vpop.f32.mrb[40].mxu0 }
 0x1b3   :  { %v7544_v27 = vpop.f32.mrb[41].mxu0  ;;  %v3718_v28 = vpop.f32.mrb[40].mxu1  ;;  %v9107_v16 = vmul.f32 %v3642_v58, %v3642_v58 }
 0x1b4   :  { %v7549_v60 = vpop.f32.mrb[41].mxu1  ;;  %v9113_v47 = vmul.f32 %v3718_v28, %v3718_v28  ;;  %v9127_v27 = vmax.f32 %v120_v3, %v121_v57 }
 0x1b5   :  { %v9131_v60 = vmax.f32 %v134_v1, %v135_v20 }
 0x1b6   :  { %v123_v54 = vrot.slane %v9127_v27, 2 }
 0x1ba   :  { %v9095_v4 = vpop.f32.mrb[42].mxu0 }
 0x1bb   :  { %v7554_v61 = vpop.f32.mrb[43].mxu0  ;;  %v9097_v7 = vpop.f32.mrb[42].mxu1  ;;  %v9144_v52 = vmul.f32 %v9095_v4, %v9095_v4 }
 0x1bc   :  { %v7559_v38 = vpop.f32.mrb[43].mxu1  ;;  %v9133_v61 = vmax.f32 %v141_v42, %v142_v30  ;;  %v218_v42 = vrot.slane %v217_v43, 4 }
 0x1bd   :  { %v209_v38 = vpop.xlane.xlu1 %208 }
 0x1be   :  { %v144_v57 = vrot.slane %v9133_v61, 2 }
 0x1c2   :  { %v9099_v41 = vpop.f32.mrb[44].mxu0 }
 0x1c3   :  { %v7564_v22 = vpop.f32.mrb[45].mxu0  ;;  %v9101_v32 = vpop.f32.mrb[44].mxu1 }
 0x1c4   :  { %v7569_v33 = vpop.f32.mrb[45].mxu1  ;;  %v9135_v22 = vmax.f32 %v148_v6, %v149_v48  ;;  %v9168_v6 = vmax.f32 %v108_v0, %v109_v36  ;;  %v9181_v36 = vmul.f32 %v9099_v41, %v9099_v41 }
 0x1c5   :  { %v210_v33 = vmin.f32 %v9087_v26, %v9085_v25  ;;  %v238_v25 = vmin.f32 %v188_v35, %v191_v34  ;;  %v9153_v26 = vmul.f32 %v9097_v7, %v9097_v7  ;;  %v225_v34 = vrot.slane %v224_v44, 4 }
 0x1c6   :  { %v151_v0 = vrot.slane %v9135_v22, 2 }
 0x1c7   :  { %v211_v1 = vrot.slane %v210_v33, 4  ;;  %v226_v30 = vmin.f32 %v224_v44, %v225_v34 }
 0x1c9   :  { %v212_v20 = vmin.f32 %v210_v33, %v211_v1 }
 0x1ca   :  { %v9103_v39 = vpop.f32.mrb[46].mxu0 }
 0x1cb   :  { %v7574_v49 = vpop.f32.mrb[47].mxu0  ;;  %v9105_v50 = vpop.f32.mrb[46].mxu1  ;;  %v213_v1 = vrot.slane %v212_v20, 2 }
 0x1cc   :  { %v7579_v13 = vpop.f32.mrb[47].mxu1 }
 0x1cd   :  { %v231_v13 = vmin.f32 %v182_v40, %v185_v23  ;;  %v252_v23 = vmin.f32 %v200_v11, %v203_v14  ;;  %v259_v40 = vmin.f32 %v206_v45, %v209_v38  ;;  %v246_v11 = vrot.slane %v245_v31, 4 }
 0x1ce   :  { %v214_v8 = vmin.f32 %v212_v20, %v213_v1 }
 0x1cf   :  { %v232_v53 = vrot.slane %v231_v13, 4 }
 0x1d1   :  { %v233_v48 = vmin.f32 %v231_v13, %v232_v53  ;;  %v247_v13 = vmin.f32 %v245_v31, %v246_v11  ;;  %v111_v53 = vrot.slane %v9168_v6, 1 }
 0x1d2   :  { %v4250_v15 = vpop.f32.mrb[48].mxu0 }
 0x1d3   :  { %v9109_v10 = vmul.f32 %v4250_v15, %v4250_v15  ;;  %v9111_v21 = vmul.f32 %v4250_v15, %v3642_v58  ;;  %v4326_v9 = vpop.f32.mrb[48].mxu1  ;;  %v7584_v46 = vpop.f32.mrb[49].mxu0  ;;  %v116_v58 = vrot.slane %v115_v2, 2  ;;  %v9170_v15 = vmax.f32 %v101_v5, %v102_v37 }
 0x1d4   :  { %v9115_v12 = vmul.f32 %v4326_v9, %v4326_v9  ;;  %v9117_v17 = vmul.f32 %v4326_v9, %v3718_v28  ;;  %v7589_v18 = vpop.f32.mrb[49].mxu1  ;;  %v9129_v28 = vmax.f32 %v127_v56, %v128_v19  ;;  %v137_v9 = vrot.slane %v9131_v60, 2 }
 0x1d5   :  { %9379 = vst [vmem:[#allocation5_spill] sm:$0xff] %v9111_v21  ;;  %v9121_v29 = vadd.f32 %v9109_v10, %v9107_v16  ;;  %v239_v46 = vrot.slane %v238_v25, 4  ;;  %v253_v18 = vrot.slane %v252_v23, 4  ;;  %v260_v19 = vrot.slane %v259_v40, 4 }
 0x1d6   :  { %9380 = vst [vmem:[#allocation6_spill] sm:$0xff] %v9117_v17  ;;  %v9125_v62 = vadd.f32 %v9115_v12, %v9113_v47  ;;  %v130_v14 = vrot.slane %v9129_v28, 2  ;;  %v219_v5 = vmin.f32 %v217_v43, %v218_v42  ;;  %v234_v31 = vrot.slane %v233_v48, 2 }
 0x1d7   :  { %v138_v11 = vmax.f32 %v9131_v60, %v137_v9 }
 0x1d8   :  { %v220_v42 = vrot.slane %v219_v5, 2 }
 0x1da   :  { %v4402_v49 = vpop.f32.mrb[50].mxu0 }
 0x1db   :  { %v9146_v51 = vmul.f32 %v4402_v49, %v4402_v49  ;;  %v9149_v55 = vmul.f32 %v4402_v49, %v9095_v4  ;;  %v4478_v3 = vpop.f32.mrb[50].mxu1  ;;  %v7594_v56 = vpop.f32.mrb[51].mxu0  ;;  %v240_v49 = vmin.f32 %v238_v25, %v239_v46  ;;  %v227_v25 = vrot.slane %v226_v30, 2 }
 0x1dc   :  { %v9155_v59 = vmul.f32 %v4478_v3, %v4478_v3  ;;  %v9158_v24 = vmul.f32 %v4478_v3, %v9097_v7  ;;  %v7599_v63 = vpop.f32.mrb[51].mxu1  ;;  %v9172_v7 = vmax.f32 %v115_v2, %v116_v58  ;;  %v9190_v3 = vmul.f32 %v9101_v32, %v9101_v32 }
 0x1dd   :  { %9381 = vst [vmem:[#allocation7_spill] sm:$0xff] %v9149_v55  ;;  %v9162_v4 = vadd.f32 %v9146_v51, %v9144_v52  ;;  %v254_v56 = vmin.f32 %v252_v23, %v253_v18  ;;  %v261_v63 = vmin.f32 %v259_v40, %v260_v19  ;;  %v124_v23 = vmax.f32 %v9127_v27, %v123_v54 }
 0x1de   :  { %9382 = vst [vmem:[#allocation8_spill] sm:$0xff] %v9158_v24  ;;  %v9166_v35 = vadd.f32 %v9155_v59, %v9153_v26  ;;  %v118_v46 = vrot.slane %v9172_v7, 1  ;;  %v131_v40 = vmax.f32 %v9129_v28, %v130_v14  ;;  %v241_v18 = vrot.slane %v240_v49, 2 }
 0x1df   :  { %v145_v19 = vmax.f32 %v9133_v61, %v144_v57  ;;  %v235_v55 = vmin.f32 %v233_v48, %v234_v31  ;;  %v9215_v27 = vmul.f32 %v9103_v39, %v9103_v39  ;;  %v215_v31 = vrot.slane %v214_v8, 1 }
 0x1e0   :  { %v242_v14 = vmin.f32 %v240_v49, %v241_v18  ;;  %v132_v48 = vrot.slane %v131_v40, 1  ;;  %v139_v49 = vrot.slane %v138_v11, 1 }
 0x1e1   :  { %v236_v18 = vrot.slane %v235_v55, 1  ;;  %v216_v21 = vmin.f32 %v214_v8, %v215_v31 }
 0x1e2   :  { %v4554_v2 = vpop.f32.mrb[52].mxu0 }
 0x1e3   :  { %v9183_v37 = vmul.f32 %v4554_v2, %v4554_v2  ;;  %v9186_v58 = vmul.f32 %v4554_v2, %v9099_v41  ;;  %v4630_v38 = vpop.f32.mrb[52].mxu1  ;;  %v7604_v45 = vpop.f32.mrb[53].mxu0  ;;  %v248_v2 = vrot.slane %v247_v13, 2 }
 0x1e4   :  { %v9192_v33 = vmul.f32 %v4630_v38, %v4630_v38  ;;  %v9195_v43 = vmul.f32 %v4630_v38, %v9101_v32  ;;  %v7609_v44 = vpop.f32.mrb[53].mxu1  ;;  %v104_v32 = vrot.slane %v9170_v15, 1  ;;  %v255_v38 = vrot.slane %v254_v56, 2 }
 0x1e5   :  { %9383 = vst [vmem:[#allocation9_spill] sm:$0xff] %v9186_v58  ;;  %v9199_v41 = vadd.f32 %v9183_v37, %v9181_v36  ;;  %v262_v45 = vrot.slane %v261_v63, 2  ;;  %v152_v44 = vmax.f32 %v9135_v22, %v151_v0  ;;  %v228_v58 = vmin.f32 %v226_v30, %v227_v25 }
 0x1e6   :  { %9384 = vst [vmem:[#allocation10_spill] sm:$0xff] %v9195_v43  ;;  %v9203_v34 = vadd.f32 %v9192_v33, %v9190_v3  ;;  %v221_v43 = vmin.f32 %v219_v5, %v220_v42  ;;  %v9224_v22 = vmul.f32 %v9105_v50, %v9105_v50  ;;  %v249_v20 = vmin.f32 %v247_v13, %v248_v2 }
 0x1e7   :  { %9385 = vst [vmem:[#allocation11_spill] sm:$0xff] %v9199_v41  ;;  %v256_v5 = vmin.f32 %v254_v56, %v255_v38  ;;  %v263_v30 = vmin.f32 %v261_v63, %v262_v45  ;;  %v112_v42 = vmax.f32 %v9168_v6, %v111_v53  ;;  %v146_v25 = vrot.slane %v145_v19, 1 }
 0x1e8   :  { %9386 = vst [vmem:[#allocation12_spill] sm:$0xff] %v9203_v34  ;;  %v105_v13 = vmax.f32 %v9170_v15, %v104_v32  ;;  %v222_v56 = vrot.slane %v221_v43, 1  ;;  %v229_v63 = vrot.slane %v228_v58, 1  ;;  %v243_v2 = vrot.slane %v242_v14, 1 }
 0x1e9   :  { %v250_v38 = vrot.slane %v249_v20, 1  ;;  %v257_v45 = vrot.slane %v256_v5, 1  ;;  %v147_v6 = vmax.f32 %v145_v19, %v146_v25 }
 0x1ea   :  { %v4706_v24 = vpop.f32.mrb[54].mxu0 }
 0x1eb   :  { %v9217_v28 = vmul.f32 %v4706_v24, %v4706_v24  ;;  %v9220_v60 = vmul.f32 %v4706_v24, %v9103_v39  ;;  %v4782_v61 = vpop.f32.mrb[54].mxu1  ;;  %v7614_v54 = vpop.f32.mrb[55].mxu0  ;;  %v125_v24 = vrot.slane %v124_v23, 1 }
 0x1ec   :  { %v9226_v9 = vmul.f32 %v4782_v61, %v4782_v61  ;;  %v9229_v57 = vmul.f32 %v4782_v61, %v9105_v50  ;;  %v7619_v0 = vpop.f32.mrb[55].mxu1  ;;  %v153_v50 = vrot.slane %v152_v44, 1  ;;  %v264_v61 = vrot.slane %v263_v30, 1 }
 0x1ed   :  { %9387 = vst [vmem:[#allocation13_spill] sm:$0xff] %v9217_v28  ;;  %9388 = vst [vmem:[#allocation14_spill] sm:$0xff] %v9220_v60  ;;  %v9233_v39 = vadd.f32 %v9217_v28, %v9215_v27  ;;  %v119_v54 = vmax.f32 %v9172_v7, %v118_v46  ;;  %v126_v0 = vmax.f32 %v124_v23, %v125_v24 }
 0x1ee   :  { %9389 = vst [vmem:[#allocation15_spill] sm:$0xff] %v9226_v9  ;;  %9390 = vst [vmem:[#allocation16_spill] sm:$0xff] %v9229_v57  ;;  %v9237_v1 = vadd.f32 %v9226_v9, %v9224_v22  ;;  %v133_v57 = vmax.f32 %v131_v40, %v132_v48  ;;  %v140_v60 = vmax.f32 %v138_v11, %v139_v49 }
 0x1ef   :  { %9391 = vst [vmem:[#allocation17_spill] sm:$0xff] %v9233_v39  ;;  %v154_v53 = vmax.f32 %v152_v44, %v153_v50  ;;  %v223_v39 = vmin.f32 %v221_v43, %v222_v56  ;;  %v230_v9 = vmin.f32 %v228_v58, %v229_v63  ;;  %v237_v28 = vmin.f32 %v235_v55, %v236_v18 }
 0x1f0   :  { %9392 = vst [vmem:[#allocation18_spill] sm:$0xff] %v9237_v1  ;;  %v244_v7 = vmin.f32 %v242_v14, %v243_v2  ;;  %v251_v46 = vmin.f32 %v249_v20, %v250_v38  ;;  %v258_v23 = vmin.f32 %v256_v5, %v257_v45  ;;  %v265_v40 = vmin.f32 %v263_v30, %v264_v61 }
 0x1f1   :  { %v155_v11 = vmax.f32 %v105_v13, %v133_v57  ;;  %v156_v24 = vmax.f32 %v112_v42, %v140_v60  ;;  %v157_v19 = vmax.f32 %v119_v54, %v147_v6  ;;  %v158_v44 = vmax.f32 %v126_v0, %v154_v53 }
 0x1f2   :  { %v9242_v17 = vpop.f32.mrb[56].mxu0  ;;  %v266_v8 = vmin.f32 %v216_v21, %v244_v7  ;;  %v267_v48 = vmin.f32 %v223_v39, %v251_v46  ;;  %v268_v49 = vmin.f32 %v230_v9, %v258_v23 }
 0x1f3   :  { %v6634_v15 = vsub.f32 %v9242_v17, %v9107_v16  ;;  %v4934_v32 = vpop.f32.mrb[56].mxu1  ;;  %v7624_v1 = vpop.f32.mrb[57].mxu0  ;;  %v269_v16 = vmin.f32 %v237_v28, %v265_v40  ;;  %v159_v14 = vmax.f32 %v155_v11, %v156_v24  ;;  %v160_v20 = vmax.f32 %v157_v19, %v158_v44 }
 0x1f4   :  { %v6635_v34 = vsub.f32 %v4934_v32, %v9113_v47  ;;  %v7629_v41 = vpop.f32.mrb[57].mxu1  ;;  %v270_v5 = vmin.f32 %v266_v8, %v267_v48 }
 0x1f5   :  { %v271_v30 = vmin.f32 %v268_v49, %v269_v16  ;;  %v161_v57 = vmax.f32 %v159_v14, %v160_v20 }
 0x1f7   :  { %v272_v60 = vmin.f32 %v270_v5, %v271_v30  ;;  %vm273_vm3 = vcmp.gt.f32.partialorder %v161_v57, 128.0 }
 0x1f9   :  { %vm275_vm4 = vcmp.lt.f32.partialorder %v272_v60, -0.5 }
 0x1fa   :  { %v5010_v17 = vpop.f32.mrb[58].mxu0 }
 0x1fb   :  { %v6636_v43 = vsub.f32 %v5010_v17, %v9144_v52  ;;  %v5086_v58 = vpop.f32.mrb[58].mxu1  ;;  %v7634_v55 = vpop.f32.mrb[59].mxu0  ;;  %v7948_v52 = vmov 1.0  }
 0x1fc   :  { %v6637_v47 = vsub.f32 %v5086_v58, %v9153_v26  ;;  %v7639_v41 = vpop.f32.mrb[59].mxu1  ;;  %v274_v25 = vsel %vm273_vm3, 255.0, %v7948_v52  ;;  %v9393_v26 = vmov 0.0  }
 0x1fd   :  { %v276_v50 = vsel %vm275_vm4, -1.0, %v9393_v26  ;;  %v9397_v26 = vld [vmem:[#allocation15_spill] sm:$0xff] }
 0x1fe   :  { %v277_v13 = vsub.f32 %v274_v25, %v276_v50 }
 0x200   :  { %v278_v38 = vmul.f32 0.01, %v277_v13  ;;  %v279_v45 = vmul.f32 0.03, %v277_v13  ;;  %v9398_v13 = vld [vmem:[#allocation17_spill] sm:$0xff] }
 0x202   :  { %v5162_v1 = vpop.f32.mrb[60].mxu0  ;;  %v9258_v7 = vmul.f32 %v279_v45, %v279_v45 }
 0x203   :  { %v6638_v21 = vsub.f32 %v5162_v1, %v9181_v36  ;;  %v5238_v39 = vpop.f32.mrb[60].mxu1  ;;  %v7644_v9 = vpop.f32.mrb[61].mxu0 }
 0x204   :  { %v6639_v28 = vsub.f32 %v5238_v39, %v9190_v3  ;;  %v7649_v42 = vpop.f32.mrb[61].mxu1  ;;  %v9254_v3 = vmul.f32 %v278_v38, %v278_v38 }
 0x205   :  { %v9396_v42 = vld [vmem:[#allocation13_spill] sm:$0xff] }
 0x206   :  { %v6723_v40 = vadd.f32 %v9125_v62, %v9254_v3  ;;  %v6725_v62 = vadd.f32 %v9166_v35, %v9254_v3  ;;  %v9395_v35 = vld [vmem:[#allocation12_spill] sm:$0xff] }
 0x207   :  { %v6727_v60 = vadd.f32 %v9395_v35, %v9254_v3 }
 0x20a   :  { %v5314_v31 = vpop.f32.mrb[62].mxu0 }
 0x20b   :  { %v6640_v56 = vsub.f32 %v5314_v31, %v9215_v27  ;;  %v5390_v63 = vpop.f32.mrb[62].mxu1  ;;  %v7654_v18 = vpop.f32.mrb[63].mxu0 }
 0x20c   :  { %v6641_v2 = vsub.f32 %v5390_v63, %v9224_v22  ;;  %v7659_v36 = vpop.f32.mrb[63].mxu1  ;;  %v6722_v22 = vadd.f32 %v9121_v29, %v9254_v3  ;;  %v6724_v29 = vadd.f32 %v9162_v4, %v9254_v3  ;;  %v9394_v4 = vld [vmem:[#allocation11_spill] sm:$0xff]  ;;  %v6728_v63 = vadd.f32 %v9398_v13, %v9254_v3 }
 0x20d   :  { %v6726_v30 = vadd.f32 %v9394_v4, %v9254_v3  ;;  %v9399_v36 = vld [vmem:[#allocation18_spill] sm:$0xff] }
 0x20e   :  { %v6729_v38 = vadd.f32 %v9399_v36, %v9254_v3 }
 0x212   :  { %v5466_v61 = vpop.f32.mrb[64].mxu0 }
 0x213   :  { %v6642_v54 = vsub.f32 %v5466_v61, %v9109_v10  ;;  %v5542_v0 = vpop.f32.mrb[64].mxu1  ;;  %v7664_v6 = vpop.f32.mrb[65].mxu0 }
 0x214   :  { %v6643_v53 = vsub.f32 %v5542_v0, %v9115_v12  ;;  %v7669_v32 = vpop.f32.mrb[65].mxu1  ;;  %v9400_v6 = vld [vmem:[#allocation5_spill] sm:$0xff] }
 0x215   :  { %v6674_v27 = vadd.f32 %v6642_v54, %v6634_v15 }
 0x216   :  { %v6675_v46 = vadd.f32 %v6643_v53, %v6635_v34 }
 0x217   :  { %v6682_v23 = vadd.f32 %v6674_v27, %v9258_v7  ;;  %v9401_v27 = vld [vmem:[#allocation6_spill] sm:$0xff] }
 0x218   :  { %v6683_v11 = vadd.f32 %v6675_v46, %v9258_v7  ;;  %v6691_v46 = vmul.f32 2.0, %v9401_v27 }
 0x219   :  { %v6730_v10 = vmul.f32 %v6722_v22, %v6682_v23 }
 0x21a   :  { %v6731_v24 = vmul.f32 %v6723_v40, %v6683_v11  ;;  %v5618_v19 = vpop.f32.mrb[66].mxu0 }
 0x21b   :  { %v6644_v12 = vsub.f32 %v5618_v19, %v9146_v51  ;;  %v5694_v44 = vpop.f32.mrb[66].mxu1  ;;  %v7674_v8 = vpop.f32.mrb[67].mxu0  ;;  %7905 = vrcp.f32 %v6730_v10  ;;  %v6699_v19 = vadd.f32 %v6691_v46, %v9254_v3 }
 0x21c   :  { %v6645_v15 = vsub.f32 %v5694_v44, %v9155_v59  ;;  %v7679_v34 = vpop.f32.mrb[67].mxu1  ;;  %7907 = vrcp.f32 %v6731_v24 }
 0x21d   :  { %v6676_v48 = vadd.f32 %v6644_v12, %v6636_v43 }
 0x21e   :  { %v6677_v49 = vadd.f32 %v6645_v15, %v6637_v47 }
 0x21f   :  { %v6684_v16 = vadd.f32 %v6676_v48, %v9258_v7 }
 0x220   :  { %v6685_v17 = vadd.f32 %v6677_v49, %v9258_v7  ;;  %v9402_v49 = vld [vmem:[#allocation7_spill] sm:$0xff] }
 0x221   :  { %v6732_v58 = vmul.f32 %v6724_v29, %v6684_v16  ;;  %v6692_v29 = vmul.f32 2.0, %v9402_v49 }
 0x222   :  { %v6733_v55 = vmul.f32 %v6725_v62, %v6685_v17  ;;  %v5770_v51 = vpop.f32.mrb[68].mxu0 }
 0x223   :  { %v6646_v41 = vsub.f32 %v5770_v51, %v9183_v37  ;;  %v5846_v14 = vpop.f32.mrb[68].mxu1  ;;  %v7684_v59 = vpop.f32.mrb[69].mxu0  ;;  %7909 = vrcp.f32 %v6732_v58  ;;  %v6700_v4 = vadd.f32 %v6692_v29, %v9254_v3 }
 0x224   :  { %v6647_v43 = vsub.f32 %v5846_v14, %v9192_v33  ;;  %v7689_v47 = vpop.f32.mrb[69].mxu1  ;;  %7911 = vrcp.f32 %v6733_v55 }
 0x225   :  { %v6678_v20 = vadd.f32 %v6646_v41, %v6638_v21  ;;  %v7906_v8 = vpop.eup %7905  ;;  %v9403_v41 = vld [vmem:[#allocation8_spill] sm:$0xff] }
 0x226   :  { %v6679_v5 = vadd.f32 %v6647_v43, %v6639_v28  ;;  %v7908_v48 = vpop.eup %7907  ;;  %v6693_v14 = vmul.f32 2.0, %v9403_v41 }
 0x227   :  { %v6686_v57 = vadd.f32 %v6678_v20, %v9258_v7 }
 0x228   :  { %v6687_v1 = vadd.f32 %v6679_v5, %v9258_v7 }
 0x229   :  { %v6734_v39 = vmul.f32 %v6726_v30, %v6686_v57  ;;  %v6701_v57 = vadd.f32 %v6693_v14, %v9254_v3 }
 0x22a   :  { %v6735_v9 = vmul.f32 %v6727_v60, %v6687_v1  ;;  %v5922_v37 = vpop.f32.mrb[70].mxu0 }
 0x22b   :  { %v6648_v52 = vsub.f32 %v5922_v37, %v9396_v42  ;;  %v5998_v25 = vpop.f32.mrb[70].mxu1  ;;  %v7694_v33 = vpop.f32.mrb[71].mxu0  ;;  %7913 = vrcp.f32 %v6734_v39 }
 0x22c   :  { %v6649_v21 = vsub.f32 %v5998_v25, %v9397_v26  ;;  %v7699_v28 = vpop.f32.mrb[71].mxu1  ;;  %7915 = vrcp.f32 %v6735_v9  ;;  %v9404_v25 = vld [vmem:[#allocation9_spill] sm:$0xff] }
 0x22d   :  { %v6680_v50 = vadd.f32 %v6648_v52, %v6640_v56  ;;  %v6690_v56 = vmul.f32 2.0, %v9400_v6  ;;  %v7910_v1 = vpop.eup %7909  ;;  %v6694_v33 = vmul.f32 2.0, %v9404_v25 }
 0x22e   :  { %v6681_v31 = vadd.f32 %v6649_v21, %v6641_v2  ;;  %v7912_v52 = vpop.eup %7911 }
 0x22f   :  { %v6688_v18 = vadd.f32 %v6680_v50, %v9258_v7  ;;  %v6698_v10 = vadd.f32 %v6690_v56, %v9254_v3 }
 0x230   :  { %v6689_v45 = vadd.f32 %v6681_v31, %v9258_v7  ;;  %v9405_v31 = vld [vmem:[#allocation10_spill] sm:$0xff] }
 0x231   :  { %v9290_v61 = vmul.f32 %v6728_v63, %v6688_v18  ;;  %v6695_v13 = vmul.f32 2.0, %v9405_v31 }
 0x232   :  { %v9292_v54 = vmul.f32 %v6729_v38, %v6689_v45  ;;  %v6074_v0 = vpop.f32.mrb[72].mxu0 }
 0x233   :  { %v6650_v2 = vsub.f32 %v6074_v0, %v9400_v6  ;;  %v6150_v53 = vpop.f32.mrb[72].mxu1  ;;  %v7704_v32 = vpop.f32.mrb[73].mxu0  ;;  %v6702_v0 = vadd.f32 %v6694_v33, %v9254_v3  ;;  %v6703_v56 = vadd.f32 %v6695_v13, %v9254_v3  ;;  %7917 = vrcp.f32 %v9290_v61 }
 0x234   :  { %v6651_v22 = vsub.f32 %v6150_v53, %v9401_v27  ;;  %v7709_v23 = vpop.f32.mrb[73].mxu1  ;;  %7919 = vrcp.f32 %v9292_v54 }
 0x235   :  { %v6658_v40 = vmul.f32 2.0, %v6650_v2  ;;  %v7914_v32 = vpop.eup %7913  ;;  %v9406_v23 = vld [vmem:[#allocation14_spill] sm:$0xff] }
 0x236   :  { %v6659_v11 = vmul.f32 2.0, %v6651_v22  ;;  %v7916_v22 = vpop.eup %7915 }
 0x237   :  { %v6666_v24 = vadd.f32 %v6658_v40, %v9258_v7  ;;  %v6696_v40 = vmul.f32 2.0, %v9406_v23 }
 0x238   :  { %v6667_v12 = vadd.f32 %v6659_v11, %v9258_v7 }
 0x239   :  { %v6706_v44 = vmul.f32 %v6698_v10, %v6666_v24  ;;  %v6704_v29 = vadd.f32 %v6696_v40, %v9254_v3 }
 0x23a   :  { %v6226_v15 = vpop.f32.mrb[74].mxu0  ;;  %v6707_v34 = vmul.f32 %v6699_v19, %v6667_v12  ;;  %v9407_v12 = vld [vmem:[#allocation16_spill] sm:$0xff] }
 0x23b   :  { %v6652_v16 = vsub.f32 %v6226_v15, %v9402_v49  ;;  %v6302_v62 = vpop.f32.mrb[74].mxu1  ;;  %v7714_v17 = vpop.f32.mrb[75].mxu0  ;;  %v6746_v51 = vmul.f32 %v7906_v8, %v6706_v44  ;;  %v6697_v44 = vmul.f32 2.0, %v9407_v12 }
 0x23c   :  { %v6653_v58 = vsub.f32 %v6302_v62, %v9403_v41  ;;  %v7719_v59 = vpop.f32.mrb[75].mxu1  ;;  %v6747_v43 = vmul.f32 %v7908_v48, %v6707_v34 }
 0x23d   :  { %v6660_v55 = vmul.f32 2.0, %v6652_v16  ;;  %v6755_v47 = vsel %vm6754_vm5, %v6746_v51, 0.0  ;;  %v6705_v62 = vadd.f32 %v6697_v44, %v9254_v3  ;;  %v7918_v41 = vpop.eup %7917 }
 0x23e   :  { %v6661_v20 = vmul.f32 2.0, %v6653_v58  ;;  %v6758_v5 = vsel %vm6754_vm5, %v6747_v43, 0.0  ;;  %6756 = vadd.xlane.f32.xlu0 %v6755_v47  ;;  %v7920_v58 = vpop.eup %7919 }
 0x23f   :  { %v6668_v30 = vadd.f32 %v6660_v55, %v9258_v7  ;;  %6759 = vadd.xlane.f32.xlu1 %v6758_v5 }
 0x240   :  { %v6669_v35 = vadd.f32 %v6661_v20, %v9258_v7 }
 0x241   :  { %v6708_v60 = vmul.f32 %v6700_v4, %v6668_v30 }
 0x242   :  { %v6378_v37 = vpop.f32.mrb[76].mxu0  ;;  %v6709_v42 = vmul.f32 %v6701_v57, %v6669_v35 }
 0x243   :  { %v6654_v26 = vsub.f32 %v6378_v37, %v9404_v25  ;;  %v6454_v21 = vpop.f32.mrb[76].mxu1  ;;  %v7724_v28 = vpop.f32.mrb[77].mxu0  ;;  %v6748_v50 = vmul.f32 %v7910_v1, %v6708_v60 }
 0x244   :  { %v6655_v63 = vsub.f32 %v6454_v21, %v9405_v31  ;;  %v7729_v39 = vpop.f32.mrb[77].mxu1  ;;  %v6749_v18 = vmul.f32 %v7912_v52, %v6709_v42 }
 0x245   :  { %v6662_v36 = vmul.f32 2.0, %v6654_v26  ;;  %v6761_v9 = vsel %vm6754_vm5, %v6748_v50, 0.0 }
 0x246   :  { %v6663_v38 = vmul.f32 2.0, %v6655_v63  ;;  %v6764_v45 = vsel %vm6754_vm5, %v6749_v18, 0.0  ;;  %6762 = vadd.xlane.f32.xlu0 %v6761_v9 }
 0x247   :  { %v6670_v6 = vadd.f32 %v6662_v36, %v9258_v7  ;;  %6765 = vadd.xlane.f32.xlu1 %v6764_v45 }
 0x248   :  { %v6671_v2 = vadd.f32 %v6663_v38, %v9258_v7 }
 0x249   :  { %v6710_v53 = vmul.f32 %v6702_v0, %v6670_v6 }
 0x24a   :  { %v6530_v27 = vpop.f32.mrb[78].mxu0  ;;  %v6711_v46 = vmul.f32 %v6703_v56, %v6671_v2 }
 0x24b   :  { %v6656_v11 = vsub.f32 %v6530_v27, %v9406_v23  ;;  %v6606_v10 = vpop.f32.mrb[78].mxu1  ;;  %v7734_v24 = vpop.f32.mrb[79].mxu0  ;;  %v6750_v19 = vmul.f32 %v7914_v32, %v6710_v53 }
 0x24c   :  { %v6657_v61 = vsub.f32 %v6606_v10, %v9407_v12  ;;  %v7739_v8 = vpop.f32.mrb[79].mxu1  ;;  %v6751_v15 = vmul.f32 %v7916_v22, %v6711_v46 }
 0x24d   :  { %v6664_v34 = vmul.f32 2.0, %v6656_v11  ;;  %v6767_v54 = vsel %vm6754_vm5, %v6750_v19, 0.0 }
 0x24e   :  { %v6665_v48 = vmul.f32 2.0, %v6657_v61  ;;  %v6770_v49 = vsel %vm6754_vm5, %v6751_v15, 0.0  ;;  %6768 = vadd.xlane.f32.xlu0 %v6767_v54 }
 0x24f   :  { %v6672_v16 = vadd.f32 %v6664_v34, %v9258_v7  ;;  %6771 = vadd.xlane.f32.xlu1 %v6770_v49 }
 0x250   :  { %v6673_v17 = vadd.f32 %v6665_v48, %v9258_v7 }
 0x251   :  { %v6712_v51 = vmul.f32 %v6704_v29, %v6672_v16 }
 0x252   :  { %v6713_v14 = vmul.f32 %v6705_v62, %v6673_v17 }
 0x253   :  { %v6752_v59 = vmul.f32 %v7918_v41, %v6712_v51 }
 0x254   :  { %v6753_v43 = vmul.f32 %v7920_v58, %v6713_v14 }
 0x255   :  { %v6773_v55 = vsel %vm6754_vm5, %v6752_v59, 0.0 }
 0x256   :  { %v6776_v47 = vsel %vm6754_vm5, %v6753_v43, 0.0  ;;  %6774 = vadd.xlane.f32.xlu0 %v6773_v55 }
 0x257   :  { %6777 = vadd.xlane.f32.xlu1 %v6776_v47 }
 0x2cb   :  { %v6757_v20 = vpop.xlane.xlu0 %6756 }
 0x2cc   :  { %v6760_v5 = vpop.xlane.xlu1 %6759  ;;  %v6780_v4 = vsel %vm6779_vm6, %v6757_v20, 0.0 }
 0x2cd   :  { %v6787_v3 = vsel %vm6779_vm6, %v6760_v5, 0.0  ;;  %v6781_v7 = vrot.slane %v6780_v4, 4 }
 0x2ce   :  { %v6788_v30 = vrot.slane %v6787_v3, 4 }
 0x2cf   :  { %v6782_v57 = vadd.f32 %v6781_v7, %v6780_v4 }
 0x2d0   :  { %v6789_v35 = vadd.f32 %v6788_v30, %v6787_v3 }
 0x2d1   :  { %v6783_v1 = vrot.slane %v6782_v57, 2 }
 0x2d2   :  { %v6790_v60 = vrot.slane %v6789_v35, 2 }
 0x2d3   :  { %v6763_v37 = vpop.xlane.xlu0 %6762  ;;  %v6784_v21 = vadd.f32 %v6783_v1, %v6782_v57 }
 0x2d4   :  { %v6766_v42 = vpop.xlane.xlu1 %6765  ;;  %v6794_v52 = vsel %vm6779_vm6, %v6763_v37, 0.0  ;;  %v6791_v26 = vadd.f32 %v6790_v60, %v6789_v35 }
 0x2d5   :  { %v6801_v25 = vsel %vm6779_vm6, %v6766_v42, 0.0  ;;  %v6795_v33 = vrot.slane %v6794_v52, 4  ;;  %v6785_v39 = vrot.slane %v6784_v21, 1 }
 0x2d6   :  { %v6802_v28 = vrot.slane %v6801_v25, 4  ;;  %v6792_v63 = vrot.slane %v6791_v26, 1 }
 0x2d7   :  { %v6796_v50 = vadd.f32 %v6795_v33, %v6794_v52  ;;  %v6786_v53 = vadd.f32 %v6785_v39, %v6784_v21 }
 0x2d8   :  { %v6803_v31 = vadd.f32 %v6802_v28, %v6801_v25  ;;  %v6793_v2 = vadd.f32 %v6792_v63, %v6791_v26 }
 0x2d9   :  { %v6797_v13 = vrot.slane %v6796_v50, 2 }
 0x2da   :  { %v6804_v18 = vrot.slane %v6803_v31, 2  ;;  %v6836_v11 = vadd.f32 %v6793_v2, %v6786_v53 }
 0x2db   :  { %v6798_v36 = vadd.f32 %v6797_v13, %v6796_v50  ;;  %v6769_v9 = vpop.xlane.xlu0 %6768 }
 0x2dc   :  { %v6772_v38 = vpop.xlane.xlu1 %6771  ;;  %v6808_v45 = vsel %vm6779_vm6, %v6769_v9, 0.0  ;;  %v6805_v27 = vadd.f32 %v6804_v18, %v6803_v31 }
 0x2dd   :  { %v6799_v0 = vrot.slane %v6798_v36, 1  ;;  %v6815_v6 = vsel %vm6779_vm6, %v6772_v38, 0.0  ;;  %v6809_v56 = vrot.slane %v6808_v45, 4 }
 0x2de   :  { %v6816_v32 = vrot.slane %v6815_v6, 4  ;;  %v6806_v24 = vrot.slane %v6805_v27, 1 }
 0x2df   :  { %v6810_v46 = vadd.f32 %v6809_v56, %v6808_v45  ;;  %v6800_v22 = vadd.f32 %v6799_v0, %v6798_v36 }
 0x2e0   :  { %v6817_v23 = vadd.f32 %v6816_v32, %v6815_v6  ;;  %v6807_v29 = vadd.f32 %v6806_v24, %v6805_v27 }
 0x2e1   :  { %v6811_v40 = vrot.slane %v6810_v46, 2  ;;  %v6837_v44 = vadd.f32 %v6836_v11, %v6800_v22 }
 0x2e2   :  { %v6818_v10 = vrot.slane %v6817_v23, 2 }
 0x2e3   :  { %v6812_v19 = vadd.f32 %v6811_v40, %v6810_v46  ;;  %v6775_v12 = vpop.xlane.xlu0 %6774  ;;  %v6838_v41 = vadd.f32 %v6837_v44, %v6807_v29 }
 0x2e4   :  { %v6778_v61 = vpop.xlane.xlu1 %6777  ;;  %v6822_v8 = vsel %vm6779_vm6, %v6775_v12, 0.0  ;;  %v6819_v15 = vadd.f32 %v6818_v10, %v6817_v23 }
 0x2e5   :  { %v6813_v34 = vrot.slane %v6812_v19, 1  ;;  %v6829_v54 = vsel %vm6779_vm6, %v6778_v61, 0.0  ;;  %v6823_v48 = vrot.slane %v6822_v8, 4 }
 0x2e6   :  { %v6830_v49 = vrot.slane %v6829_v54, 4  ;;  %v6820_v51 = vrot.slane %v6819_v15, 1 }
 0x2e7   :  { %v6814_v16 = vadd.f32 %v6813_v34, %v6812_v19  ;;  %v6824_v62 = vadd.f32 %v6823_v48, %v6822_v8 }
 0x2e8   :  { %v6831_v17 = vadd.f32 %v6830_v49, %v6829_v54  ;;  %v6821_v47 = vadd.f32 %v6820_v51, %v6819_v15 }
 0x2e9   :  { %v6825_v14 = vrot.slane %v6824_v62, 2  ;;  %v6839_v59 = vadd.f32 %v6838_v41, %v6814_v16 }
 0x2ea   :  { %v6832_v58 = vrot.slane %v6831_v17, 2 }
 0x2eb   :  { %v6826_v43 = vadd.f32 %v6825_v14, %v6824_v62  ;;  %v6840_v3 = vadd.f32 %v6839_v59, %v6821_v47 }
 0x2ec   :  { %v6833_v55 = vadd.f32 %v6832_v58, %v6831_v17 }
 0x2ed   :  { %v6827_v20 = vrot.slane %v6826_v43, 1 }
 0x2ee   :  { %v6834_v5 = vrot.slane %v6833_v55, 1 }
 0x2ef   :  { %v6828_v4 = vadd.f32 %v6827_v20, %v6826_v43 }
 0x2f0   :  { %v6835_v7 = vadd.f32 %v6834_v5, %v6833_v55 }
 0x2f1   :  { %v6841_v30 = vadd.f32 %v6840_v3, %v6828_v4 }
 0x2f3   :  { %v6842_v57 = vadd.f32 %v6841_v30, %v6835_v7 }
 0x2f5   :  { %v6843_v35 = vmul.f32 0.0034722222, %v6842_v57 }
 0x2f7   :  { %6845 = vst.msk [vmem:[#allocation2] sm:$0x1] %vm6844_vm7, %v6843_v35 }
 0x2f8   :  { %7932 = shalt.err (!%p7929_p4)
}
 0x2f9   :  { %s7933_s20 = scalar_lea.hbm %s9360_s4, 16 }
 0x2fa   :  { %p7934_p5 = scmp.ne.s32.totalorder %s9360_s4, %s7933_s20  ;;  %p7937_p6 = scmp.lt.u32.totalorder %s7933_s20, %s9360_s4 }
 0x2fc   :  { %p7939_p7 = pnand %p7937_p6, %p7934_p5 }
 0x2fe   :  { %7942 = shalt.err (!%p7939_p7)
}
 0x2ff   :  { %6855 = dma.vmem_to_hbm [thread:$0]  %s6853_s16, 16, %s9360_s4, [#allocation3]  }
 0x300   :  { %7943 = dma.done.wait [#allocation3], 16  }
 0x301   :  { %7944 = vsyncadd [#allocation3], 4294967280 }
 0x302   :  { %6859 = vsyncpa [#allocation3], 1 }

</bundles_post_ra>
